<compile_context>
chip_gen: v6e
topology: v6e:2x2x1
jax: 0.10.0
libtpu: 0.0.40
codegen_flags: <defaults>
</compile_context>

<pallas_src>
import functools

import jax
import jax.numpy as jnp
from jax import lax
from jax.experimental import pallas as pl
from jax.experimental.pallas import tpu as pltpu

D_MODEL = 32
D_FF = 64
NUM_LAYERS = 6
LN_EPS = 1e-5


# ----------------------------- fused Pallas kernel ---------------------------

def _encoder_fused_kernel(x_ref, w1_ref, b1_ref, w2_ref, b2_ref,
                          g_ref, beta_ref, o_ref, *, num_layers, apply_norm):
    """All `num_layers` residual-FFN layers + optional LayerNorm on the full
    row slab, entirely in VMEM/vregs (single program, no HBM intermediates)."""
    x0 = x_ref[...].astype(jnp.float32)                 # (R, D), R = B*num_list*L

    def layer_body(li, x):
        w1 = w1_ref[li]                                  # (D, D_FF)
        b1 = b1_ref[li]                                  # (1, D_FF)
        w2 = w2_ref[li]                                  # (D_FF, D)
        b2 = b2_ref[li]                                  # (1, D)
        h = jnp.dot(x, w1, preferred_element_type=jnp.float32) + b1
        h = jax.nn.gelu(h, approximate=True)             # tanh approx (see TODO above)
        y = jnp.dot(h, w2, preferred_element_type=jnp.float32) + b2
        return x + y

    x = lax.fori_loop(0, num_layers, layer_body, x0, unroll=True)

    if apply_norm:
        mu = jnp.mean(x, axis=-1, keepdims=True)
        var = jnp.mean(jnp.square(x - mu), axis=-1, keepdims=True)
        x = (x - mu) * lax.rsqrt(var + LN_EPS)
        x = x * g_ref[...] + beta_ref[...]

    o_ref[...] = x.astype(o_ref.dtype)


# --------------------------------- Encoder -----------------------------------

class Encoder:
    """Faithful (fused) port of the PyTorch Encoder forward pass:
    loop over layers -> cat(dim=1) -> norm, returning (x, attns)."""

    def __init__(self, layer_params, norm_params=None):
        # layer_params: (w1 [L,D,DF], b1 [L,1,DF], w2 [L,DF,D], b2 [L,1,D])
        self.w1, self.b1, self.w2, self.b2 = layer_params
        self.num_layers = self.w1.shape[0]
        self.norm_params = norm_params                   # (gamma [1,D], beta [1,D]) or None

    def __call__(self, x_list, attn_mask=None, tau=None, delta=None):
        num_list = len(x_list)
        B, L, D = x_list[0].shape
        assert D == self.w1.shape[1]
        rows = B * num_list * L
        assert rows % 8 == 0, "B * num_list * L must be a multiple of 8"

        # Stack along axis=1 so flattened row order is [b, n, l]; reshaping the
        # kernel output to (B, num_list*L, D) IS torch.cat(x, dim=1).
        x2 = jnp.stack(x_list, axis=1).reshape(rows, D)

        apply_norm = self.norm_params is not None
        if apply_norm:
            gamma, beta = self.norm_params
        else:
            gamma = jnp.ones((1, D), x2.dtype)            # unused (static flag off)
            beta = jnp.zeros((1, D), x2.dtype)

        nl, dff = self.num_layers, self.w1.shape[2]
        kernel = functools.partial(_encoder_fused_kernel,
                                   num_layers=nl, apply_norm=apply_norm)

        # Advisory cost estimate: tells XLA this custom call is cheap so it
        # does not serialize surrounding work around it.
        flops = 2 * rows * D * dff * 2 * nl + 4 * rows * D * nl + 8 * rows * D
        transcendentals = rows * dff * nl + rows          # gelu(tanh) + rsqrt
        bytes_accessed = (
            x2.size * x2.dtype.itemsize * 2               # input + output
            + (self.w1.size + self.b1.size + self.w2.size + self.b2.size)
            * self.w1.dtype.itemsize
            + (gamma.size + beta.size) * gamma.dtype.itemsize
        )

        vmem_spec = pl.BlockSpec(memory_space=pltpu.MemorySpace.VMEM)

        out = pl.pallas_call(
            kernel,
            out_shape=jax.ShapeDtypeStruct((rows, D), x2.dtype),
            # Gridless single program: every operand is a whole-array VMEM
            # block (total footprint ~110 KiB — far below VMEM on v5e/v6e/v7x).
            in_specs=[vmem_spec] * 7,
            out_specs=vmem_spec,
            cost_estimate=pl.CostEstimate(
                flops=flops,
                transcendentals=transcendentals,
                bytes_accessed=bytes_accessed),
        )(x2, self.w1, self.b1, self.w2, self.b2, gamma, beta)

        out = out.reshape(B, num_list * L, D)             # == torch.cat(x, dim=1) (+ norm)
        attns = [None] * self.num_layers                  # synthetic layers return no attn
        return out, attns


# ----------------------------------- main ------------------------------------

if __name__ == "__main__":
    key = jax.random.PRNGKey(0)
    num_layers = NUM_LAYERS        # "(Encoder) layers size should be 6"
    B, L, D = 2, 8, D_MODEL        # each list element is [B, L, D]
    num_list = 2                   # the Encoder input `x` is a list of tensors

    # deterministic stacked parameters for the 6 synthetic attn layers
    key, k1, k2 = jax.random.split(key, 3)
    w1s = jax.random.normal(k1, (num_layers, D, D_FF), jnp.float32) * 0.02
    b1s = jnp.zeros((num_layers, 1, D_FF), jnp.float32)
    w2s = jax.random.normal(k2, (num_layers, D_FF, D), jnp.float32) * 0.02
    b2s = jnp.zeros((num_layers, 1, D), jnp.float32)

    gamma = jnp.ones((1, D), jnp.float32)
    beta = jnp.zeros((1, D), jnp.float32)

    encoder = Encoder((w1s, b1s, w2s, b2s), norm_params=(gamma, beta))

    # deterministic inputs: list of [B, L, D] tensors
    key, kx1, kx2 = jax.random.split(key, 3)
    x_list = [jax.random.normal(kx1, (B, L, D), jnp.float32),
              jax.random.normal(kx2, (B, L, D), jnp.float32)]

    out, attns = encoder(x_list)
    out = jax.block_until_ready(out)

    # pure-JAX reference (same layer/cat/norm semantics) for a tolerance check
    def ref_forward(xs):
        xs = list(xs)
        for li in range(num_layers):
            new = []
            for x in xs:
                h = jax.nn.gelu(x @ w1s[li] + b1s[li][0], approximate=True)
                new.append(x + (h @ w2s[li] + b2s[li][0]))
            xs = new
        xc = jnp.concatenate(xs, axis=1)                  # torch.cat(x, dim=1)
        mu = xc.mean(-1, keepdims=True)
        var = ((xc - mu) ** 2).mean(-1, keepdims=True)
        return (xc - mu) / jnp.sqrt(var + LN_EPS) * gamma[0] + beta[0]

    ref = ref_forward(x_list)

    assert out.shape == (B, num_list * L, D), out.shape
    assert len(attns) == num_layers
    assert bool(jnp.all(jnp.isfinite(out)))
    assert bool(jnp.allclose(out, ref, atol=1e-4, rtol=1e-4)), \
        float(jnp.max(jnp.abs(out - ref)))
    print("KERNEL_OK")
</pallas_src>

<mosaic_0001>
module attributes {stable_mosaic.version = 11 : i64} {
  func.func @_encoder_fused_kernel(%arg0: memref<32x32xf32, #tpu.memory_space<vmem>>, %arg1: memref<6x32x64xf32, #tpu.memory_space<vmem>>, %arg2: memref<6x1x64xf32, #tpu.memory_space<vmem>>, %arg3: memref<6x64x32xf32, #tpu.memory_space<vmem>>, %arg4: memref<6x1x32xf32, #tpu.memory_space<vmem>>, %arg5: memref<1x32xf32, #tpu.memory_space<vmem>>, %arg6: memref<1x32xf32, #tpu.memory_space<vmem>>, %arg7: memref<32x32xf32, #tpu.memory_space<vmem>>) attributes {dimension_semantics = [], scalar_prefetch = 0 : i64, scratch_operands = 0 : i64, tpu.core_type = #tpu.core_type<tc>} {
    %c0 = arith.constant 0 : index
    %c0_0 = arith.constant 0 : index
    %0 = vector.load %arg0[%c0, %c0_0] : memref<32x32xf32, #tpu.memory_space<vmem>>, vector<32x32xf32>
    %c0_i32 = arith.constant 0 : i32
    %1 = arith.index_cast %c0_i32 : i32 to index
    %c0_1 = arith.constant 0 : index
    %c0_2 = arith.constant 0 : index
    %2 = vector.load %arg1[%1, %c0_1, %c0_2] : memref<6x32x64xf32, #tpu.memory_space<vmem>>, vector<1x32x64xf32>
    %3 = vector.shape_cast %2 : vector<1x32x64xf32> to vector<32x64xf32>
    %4 = arith.index_cast %c0_i32 : i32 to index
    %c0_3 = arith.constant 0 : index
    %c0_4 = arith.constant 0 : index
    %5 = vector.load %arg2[%4, %c0_3, %c0_4] : memref<6x1x64xf32, #tpu.memory_space<vmem>>, vector<1x1x64xf32>
    %6 = vector.shape_cast %5 : vector<1x1x64xf32> to vector<1x64xf32>
    %7 = arith.index_cast %c0_i32 : i32 to index
    %c0_5 = arith.constant 0 : index
    %c0_6 = arith.constant 0 : index
    %8 = vector.load %arg3[%7, %c0_5, %c0_6] : memref<6x64x32xf32, #tpu.memory_space<vmem>>, vector<1x64x32xf32>
    %9 = vector.shape_cast %8 : vector<1x64x32xf32> to vector<64x32xf32>
    %10 = arith.index_cast %c0_i32 : i32 to index
    %c0_7 = arith.constant 0 : index
    %c0_8 = arith.constant 0 : index
    %11 = vector.load %arg4[%10, %c0_7, %c0_8] : memref<6x1x32xf32, #tpu.memory_space<vmem>>, vector<1x1x32xf32>
    %12 = vector.shape_cast %11 : vector<1x1x32xf32> to vector<1x32xf32>
    %cst = arith.constant dense<0.000000e+00> : vector<32x64xf32>
    %13 = tpu.matmul %0, %3, %cst {dimension_numbers = #tpu.dot_dimension_numbers<[1], [0], [0], [1], [0, 0, 1, 1], [], []>} : vector<32x32xf32>, vector<32x64xf32>, vector<32x64xf32> -> vector<32x64xf32>
    %14 = vector.broadcast %6 : vector<1x64xf32> to vector<32x64xf32>
    %15 = arith.addf %13, %14 : vector<32x64xf32>
    %16 = arith.mulf %15, %15 : vector<32x64xf32>
    %17 = arith.mulf %15, %16 : vector<32x64xf32>
    %cst_9 = arith.constant 4.471500e-02 : f32
    %18 = vector.broadcast %cst_9 : f32 to vector<32x64xf32>
    %19 = arith.mulf %18, %17 : vector<32x64xf32>
    %20 = arith.addf %15, %19 : vector<32x64xf32>
    %cst_10 = arith.constant 0.797884583 : f32
    %21 = vector.broadcast %cst_10 : f32 to vector<32x64xf32>
    %22 = arith.mulf %21, %20 : vector<32x64xf32>
    %23 = math.tanh %22 : vector<32x64xf32>
    %cst_11 = arith.constant 1.000000e+00 : f32
    %24 = vector.broadcast %cst_11 : f32 to vector<32x64xf32>
    %25 = arith.addf %24, %23 : vector<32x64xf32>
    %cst_12 = arith.constant 5.000000e-01 : f32
    %26 = vector.broadcast %cst_12 : f32 to vector<32x64xf32>
    %27 = arith.mulf %26, %25 : vector<32x64xf32>
    %28 = arith.mulf %15, %27 : vector<32x64xf32>
    %cst_13 = arith.constant dense<0.000000e+00> : vector<32x32xf32>
    %29 = tpu.matmul %28, %9, %cst_13 {dimension_numbers = #tpu.dot_dimension_numbers<[1], [0], [0], [1], [0, 0, 1, 1], [], []>} : vector<32x64xf32>, vector<64x32xf32>, vector<32x32xf32> -> vector<32x32xf32>
    %30 = vector.broadcast %12 : vector<1x32xf32> to vector<32x32xf32>
    %31 = arith.addf %29, %30 : vector<32x32xf32>
    %32 = arith.addf %0, %31 : vector<32x32xf32>
    %c1_i32 = arith.constant 1 : i32
    %33 = arith.index_cast %c1_i32 : i32 to index
    %c0_14 = arith.constant 0 : index
    %c0_15 = arith.constant 0 : index
    %34 = vector.load %arg1[%33, %c0_14, %c0_15] : memref<6x32x64xf32, #tpu.memory_space<vmem>>, vector<1x32x64xf32>
    %35 = vector.shape_cast %34 : vector<1x32x64xf32> to vector<32x64xf32>
    %36 = arith.index_cast %c1_i32 : i32 to index
    %c0_16 = arith.constant 0 : index
    %c0_17 = arith.constant 0 : index
    %37 = vector.load %arg2[%36, %c0_16, %c0_17] : memref<6x1x64xf32, #tpu.memory_space<vmem>>, vector<1x1x64xf32>
    %38 = vector.shape_cast %37 : vector<1x1x64xf32> to vector<1x64xf32>
    %39 = arith.index_cast %c1_i32 : i32 to index
    %c0_18 = arith.constant 0 : index
    %c0_19 = arith.constant 0 : index
    %40 = vector.load %arg3[%39, %c0_18, %c0_19] : memref<6x64x32xf32, #tpu.memory_space<vmem>>, vector<1x64x32xf32>
    %41 = vector.shape_cast %40 : vector<1x64x32xf32> to vector<64x32xf32>
    %42 = arith.index_cast %c1_i32 : i32 to index
    %c0_20 = arith.constant 0 : index
    %c0_21 = arith.constant 0 : index
    %43 = vector.load %arg4[%42, %c0_20, %c0_21] : memref<6x1x32xf32, #tpu.memory_space<vmem>>, vector<1x1x32xf32>
    %44 = vector.shape_cast %43 : vector<1x1x32xf32> to vector<1x32xf32>
    %cst_22 = arith.constant dense<0.000000e+00> : vector<32x64xf32>
    %45 = tpu.matmul %32, %35, %cst_22 {dimension_numbers = #tpu.dot_dimension_numbers<[1], [0], [0], [1], [0, 0, 1, 1], [], []>} : vector<32x32xf32>, vector<32x64xf32>, vector<32x64xf32> -> vector<32x64xf32>
    %46 = vector.broadcast %38 : vector<1x64xf32> to vector<32x64xf32>
    %47 = arith.addf %45, %46 : vector<32x64xf32>
    %48 = arith.mulf %47, %47 : vector<32x64xf32>
    %49 = arith.mulf %47, %48 : vector<32x64xf32>
    %cst_23 = arith.constant 4.471500e-02 : f32
    %50 = vector.broadcast %cst_23 : f32 to vector<32x64xf32>
    %51 = arith.mulf %50, %49 : vector<32x64xf32>
    %52 = arith.addf %47, %51 : vector<32x64xf32>
    %cst_24 = arith.constant 0.797884583 : f32
    %53 = vector.broadcast %cst_24 : f32 to vector<32x64xf32>
    %54 = arith.mulf %53, %52 : vector<32x64xf32>
    %55 = math.tanh %54 : vector<32x64xf32>
    %cst_25 = arith.constant 1.000000e+00 : f32
    %56 = vector.broadcast %cst_25 : f32 to vector<32x64xf32>
    %57 = arith.addf %56, %55 : vector<32x64xf32>
    %cst_26 = arith.constant 5.000000e-01 : f32
    %58 = vector.broadcast %cst_26 : f32 to vector<32x64xf32>
    %59 = arith.mulf %58, %57 : vector<32x64xf32>
    %60 = arith.mulf %47, %59 : vector<32x64xf32>
    %cst_27 = arith.constant dense<0.000000e+00> : vector<32x32xf32>
    %61 = tpu.matmul %60, %41, %cst_27 {dimension_numbers = #tpu.dot_dimension_numbers<[1], [0], [0], [1], [0, 0, 1, 1], [], []>} : vector<32x64xf32>, vector<64x32xf32>, vector<32x32xf32> -> vector<32x32xf32>
    %62 = vector.broadcast %44 : vector<1x32xf32> to vector<32x32xf32>
    %63 = arith.addf %61, %62 : vector<32x32xf32>
    %64 = arith.addf %32, %63 : vector<32x32xf32>
    %c2_i32 = arith.constant 2 : i32
    %65 = arith.index_cast %c2_i32 : i32 to index
    %c0_28 = arith.constant 0 : index
    %c0_29 = arith.constant 0 : index
    %66 = vector.load %arg1[%65, %c0_28, %c0_29] : memref<6x32x64xf32, #tpu.memory_space<vmem>>, vector<1x32x64xf32>
    %67 = vector.shape_cast %66 : vector<1x32x64xf32> to vector<32x64xf32>
    %68 = arith.index_cast %c2_i32 : i32 to index
    %c0_30 = arith.constant 0 : index
    %c0_31 = arith.constant 0 : index
    %69 = vector.load %arg2[%68, %c0_30, %c0_31] : memref<6x1x64xf32, #tpu.memory_space<vmem>>, vector<1x1x64xf32>
    %70 = vector.shape_cast %69 : vector<1x1x64xf32> to vector<1x64xf32>
    %71 = arith.index_cast %c2_i32 : i32 to index
    %c0_32 = arith.constant 0 : index
    %c0_33 = arith.constant 0 : index
    %72 = vector.load %arg3[%71, %c0_32, %c0_33] : memref<6x64x32xf32, #tpu.memory_space<vmem>>, vector<1x64x32xf32>
    %73 = vector.shape_cast %72 : vector<1x64x32xf32> to vector<64x32xf32>
    %74 = arith.index_cast %c2_i32 : i32 to index
    %c0_34 = arith.constant 0 : index
    %c0_35 = arith.constant 0 : index
    %75 = vector.load %arg4[%74, %c0_34, %c0_35] : memref<6x1x32xf32, #tpu.memory_space<vmem>>, vector<1x1x32xf32>
    %76 = vector.shape_cast %75 : vector<1x1x32xf32> to vector<1x32xf32>
    %cst_36 = arith.constant dense<0.000000e+00> : vector<32x64xf32>
    %77 = tpu.matmul %64, %67, %cst_36 {dimension_numbers = #tpu.dot_dimension_numbers<[1], [0], [0], [1], [0, 0, 1, 1], [], []>} : vector<32x32xf32>, vector<32x64xf32>, vector<32x64xf32> -> vector<32x64xf32>
    %78 = vector.broadcast %70 : vector<1x64xf32> to vector<32x64xf32>
    %79 = arith.addf %77, %78 : vector<32x64xf32>
    %80 = arith.mulf %79, %79 : vector<32x64xf32>
    %81 = arith.mulf %79, %80 : vector<32x64xf32>
    %cst_37 = arith.constant 4.471500e-02 : f32
    %82 = vector.broadcast %cst_37 : f32 to vector<32x64xf32>
    %83 = arith.mulf %82, %81 : vector<32x64xf32>
    %84 = arith.addf %79, %83 : vector<32x64xf32>
    %cst_38 = arith.constant 0.797884583 : f32
    %85 = vector.broadcast %cst_38 : f32 to vector<32x64xf32>
    %86 = arith.mulf %85, %84 : vector<32x64xf32>
    %87 = math.tanh %86 : vector<32x64xf32>
    %cst_39 = arith.constant 1.000000e+00 : f32
    %88 = vector.broadcast %cst_39 : f32 to vector<32x64xf32>
    %89 = arith.addf %88, %87 : vector<32x64xf32>
    %cst_40 = arith.constant 5.000000e-01 : f32
    %90 = vector.broadcast %cst_40 : f32 to vector<32x64xf32>
    %91 = arith.mulf %90, %89 : vector<32x64xf32>
    %92 = arith.mulf %79, %91 : vector<32x64xf32>
    %cst_41 = arith.constant dense<0.000000e+00> : vector<32x32xf32>
    %93 = tpu.matmul %92, %73, %cst_41 {dimension_numbers = #tpu.dot_dimension_numbers<[1], [0], [0], [1], [0, 0, 1, 1], [], []>} : vector<32x64xf32>, vector<64x32xf32>, vector<32x32xf32> -> vector<32x32xf32>
    %94 = vector.broadcast %76 : vector<1x32xf32> to vector<32x32xf32>
    %95 = arith.addf %93, %94 : vector<32x32xf32>
    %96 = arith.addf %64, %95 : vector<32x32xf32>
    %c3_i32 = arith.constant 3 : i32
    %97 = arith.index_cast %c3_i32 : i32 to index
    %c0_42 = arith.constant 0 : index
    %c0_43 = arith.constant 0 : index
    %98 = vector.load %arg1[%97, %c0_42, %c0_43] : memref<6x32x64xf32, #tpu.memory_space<vmem>>, vector<1x32x64xf32>
    %99 = vector.shape_cast %98 : vector<1x32x64xf32> to vector<32x64xf32>
    %100 = arith.index_cast %c3_i32 : i32 to index
    %c0_44 = arith.constant 0 : index
    %c0_45 = arith.constant 0 : index
    %101 = vector.load %arg2[%100, %c0_44, %c0_45] : memref<6x1x64xf32, #tpu.memory_space<vmem>>, vector<1x1x64xf32>
    %102 = vector.shape_cast %101 : vector<1x1x64xf32> to vector<1x64xf32>
    %103 = arith.index_cast %c3_i32 : i32 to index
    %c0_46 = arith.constant 0 : index
    %c0_47 = arith.constant 0 : index
    %104 = vector.load %arg3[%103, %c0_46, %c0_47] : memref<6x64x32xf32, #tpu.memory_space<vmem>>, vector<1x64x32xf32>
    %105 = vector.shape_cast %104 : vector<1x64x32xf32> to vector<64x32xf32>
    %106 = arith.index_cast %c3_i32 : i32 to index
    %c0_48 = arith.constant 0 : index
    %c0_49 = arith.constant 0 : index
    %107 = vector.load %arg4[%106, %c0_48, %c0_49] : memref<6x1x32xf32, #tpu.memory_space<vmem>>, vector<1x1x32xf32>
    %108 = vector.shape_cast %107 : vector<1x1x32xf32> to vector<1x32xf32>
    %cst_50 = arith.constant dense<0.000000e+00> : vector<32x64xf32>
    %109 = tpu.matmul %96, %99, %cst_50 {dimension_numbers = #tpu.dot_dimension_numbers<[1], [0], [0], [1], [0, 0, 1, 1], [], []>} : vector<32x32xf32>, vector<32x64xf32>, vector<32x64xf32> -> vector<32x64xf32>
    %110 = vector.broadcast %102 : vector<1x64xf32> to vector<32x64xf32>
    %111 = arith.addf %109, %110 : vector<32x64xf32>
    %112 = arith.mulf %111, %111 : vector<32x64xf32>
    %113 = arith.mulf %111, %112 : vector<32x64xf32>
    %cst_51 = arith.constant 4.471500e-02 : f32
    %114 = vector.broadcast %cst_51 : f32 to vector<32x64xf32>
    %115 = arith.mulf %114, %113 : vector<32x64xf32>
    %116 = arith.addf %111, %115 : vector<32x64xf32>
    %cst_52 = arith.constant 0.797884583 : f32
    %117 = vector.broadcast %cst_52 : f32 to vector<32x64xf32>
    %118 = arith.mulf %117, %116 : vector<32x64xf32>
    %119 = math.tanh %118 : vector<32x64xf32>
    %cst_53 = arith.constant 1.000000e+00 : f32
    %120 = vector.broadcast %cst_53 : f32 to vector<32x64xf32>
    %121 = arith.addf %120, %119 : vector<32x64xf32>
    %cst_54 = arith.constant 5.000000e-01 : f32
    %122 = vector.broadcast %cst_54 : f32 to vector<32x64xf32>
    %123 = arith.mulf %122, %121 : vector<32x64xf32>
    %124 = arith.mulf %111, %123 : vector<32x64xf32>
    %cst_55 = arith.constant dense<0.000000e+00> : vector<32x32xf32>
    %125 = tpu.matmul %124, %105, %cst_55 {dimension_numbers = #tpu.dot_dimension_numbers<[1], [0], [0], [1], [0, 0, 1, 1], [], []>} : vector<32x64xf32>, vector<64x32xf32>, vector<32x32xf32> -> vector<32x32xf32>
    %126 = vector.broadcast %108 : vector<1x32xf32> to vector<32x32xf32>
    %127 = arith.addf %125, %126 : vector<32x32xf32>
    %128 = arith.addf %96, %127 : vector<32x32xf32>
    %c4_i32 = arith.constant 4 : i32
    %129 = arith.index_cast %c4_i32 : i32 to index
    %c0_56 = arith.constant 0 : index
    %c0_57 = arith.constant 0 : index
    %130 = vector.load %arg1[%129, %c0_56, %c0_57] : memref<6x32x64xf32, #tpu.memory_space<vmem>>, vector<1x32x64xf32>
    %131 = vector.shape_cast %130 : vector<1x32x64xf32> to vector<32x64xf32>
    %132 = arith.index_cast %c4_i32 : i32 to index
    %c0_58 = arith.constant 0 : index
    %c0_59 = arith.constant 0 : index
    %133 = vector.load %arg2[%132, %c0_58, %c0_59] : memref<6x1x64xf32, #tpu.memory_space<vmem>>, vector<1x1x64xf32>
    %134 = vector.shape_cast %133 : vector<1x1x64xf32> to vector<1x64xf32>
    %135 = arith.index_cast %c4_i32 : i32 to index
    %c0_60 = arith.constant 0 : index
    %c0_61 = arith.constant 0 : index
    %136 = vector.load %arg3[%135, %c0_60, %c0_61] : memref<6x64x32xf32, #tpu.memory_space<vmem>>, vector<1x64x32xf32>
    %137 = vector.shape_cast %136 : vector<1x64x32xf32> to vector<64x32xf32>
    %138 = arith.index_cast %c4_i32 : i32 to index
    %c0_62 = arith.constant 0 : index
    %c0_63 = arith.constant 0 : index
    %139 = vector.load %arg4[%138, %c0_62, %c0_63] : memref<6x1x32xf32, #tpu.memory_space<vmem>>, vector<1x1x32xf32>
    %140 = vector.shape_cast %139 : vector<1x1x32xf32> to vector<1x32xf32>
    %cst_64 = arith.constant dense<0.000000e+00> : vector<32x64xf32>
    %141 = tpu.matmul %128, %131, %cst_64 {dimension_numbers = #tpu.dot_dimension_numbers<[1], [0], [0], [1], [0, 0, 1, 1], [], []>} : vector<32x32xf32>, vector<32x64xf32>, vector<32x64xf32> -> vector<32x64xf32>
    %142 = vector.broadcast %134 : vector<1x64xf32> to vector<32x64xf32>
    %143 = arith.addf %141, %142 : vector<32x64xf32>
    %144 = arith.mulf %143, %143 : vector<32x64xf32>
    %145 = arith.mulf %143, %144 : vector<32x64xf32>
    %cst_65 = arith.constant 4.471500e-02 : f32
    %146 = vector.broadcast %cst_65 : f32 to vector<32x64xf32>
    %147 = arith.mulf %146, %145 : vector<32x64xf32>
    %148 = arith.addf %143, %147 : vector<32x64xf32>
    %cst_66 = arith.constant 0.797884583 : f32
    %149 = vector.broadcast %cst_66 : f32 to vector<32x64xf32>
    %150 = arith.mulf %149, %148 : vector<32x64xf32>
    %151 = math.tanh %150 : vector<32x64xf32>
    %cst_67 = arith.constant 1.000000e+00 : f32
    %152 = vector.broadcast %cst_67 : f32 to vector<32x64xf32>
    %153 = arith.addf %152, %151 : vector<32x64xf32>
    %cst_68 = arith.constant 5.000000e-01 : f32
    %154 = vector.broadcast %cst_68 : f32 to vector<32x64xf32>
    %155 = arith.mulf %154, %153 : vector<32x64xf32>
    %156 = arith.mulf %143, %155 : vector<32x64xf32>
    %cst_69 = arith.constant dense<0.000000e+00> : vector<32x32xf32>
    %157 = tpu.matmul %156, %137, %cst_69 {dimension_numbers = #tpu.dot_dimension_numbers<[1], [0], [0], [1], [0, 0, 1, 1], [], []>} : vector<32x64xf32>, vector<64x32xf32>, vector<32x32xf32> -> vector<32x32xf32>
    %158 = vector.broadcast %140 : vector<1x32xf32> to vector<32x32xf32>
    %159 = arith.addf %157, %158 : vector<32x32xf32>
    %160 = arith.addf %128, %159 : vector<32x32xf32>
    %c5_i32 = arith.constant 5 : i32
    %161 = arith.index_cast %c5_i32 : i32 to index
    %c0_70 = arith.constant 0 : index
    %c0_71 = arith.constant 0 : index
    %162 = vector.load %arg1[%161, %c0_70, %c0_71] : memref<6x32x64xf32, #tpu.memory_space<vmem>>, vector<1x32x64xf32>
    %163 = vector.shape_cast %162 : vector<1x32x64xf32> to vector<32x64xf32>
    %164 = arith.index_cast %c5_i32 : i32 to index
    %c0_72 = arith.constant 0 : index
    %c0_73 = arith.constant 0 : index
    %165 = vector.load %arg2[%164, %c0_72, %c0_73] : memref<6x1x64xf32, #tpu.memory_space<vmem>>, vector<1x1x64xf32>
    %166 = vector.shape_cast %165 : vector<1x1x64xf32> to vector<1x64xf32>
    %167 = arith.index_cast %c5_i32 : i32 to index
    %c0_74 = arith.constant 0 : index
    %c0_75 = arith.constant 0 : index
    %168 = vector.load %arg3[%167, %c0_74, %c0_75] : memref<6x64x32xf32, #tpu.memory_space<vmem>>, vector<1x64x32xf32>
    %169 = vector.shape_cast %168 : vector<1x64x32xf32> to vector<64x32xf32>
    %170 = arith.index_cast %c5_i32 : i32 to index
    %c0_76 = arith.constant 0 : index
    %c0_77 = arith.constant 0 : index
    %171 = vector.load %arg4[%170, %c0_76, %c0_77] : memref<6x1x32xf32, #tpu.memory_space<vmem>>, vector<1x1x32xf32>
    %172 = vector.shape_cast %171 : vector<1x1x32xf32> to vector<1x32xf32>
    %cst_78 = arith.constant dense<0.000000e+00> : vector<32x64xf32>
    %173 = tpu.matmul %160, %163, %cst_78 {dimension_numbers = #tpu.dot_dimension_numbers<[1], [0], [0], [1], [0, 0, 1, 1], [], []>} : vector<32x32xf32>, vector<32x64xf32>, vector<32x64xf32> -> vector<32x64xf32>
    %174 = vector.broadcast %166 : vector<1x64xf32> to vector<32x64xf32>
    %175 = arith.addf %173, %174 : vector<32x64xf32>
    %176 = arith.mulf %175, %175 : vector<32x64xf32>
    %177 = arith.mulf %175, %176 : vector<32x64xf32>
    %cst_79 = arith.constant 4.471500e-02 : f32
    %178 = vector.broadcast %cst_79 : f32 to vector<32x64xf32>
    %179 = arith.mulf %178, %177 : vector<32x64xf32>
    %180 = arith.addf %175, %179 : vector<32x64xf32>
    %cst_80 = arith.constant 0.797884583 : f32
    %181 = vector.broadcast %cst_80 : f32 to vector<32x64xf32>
    %182 = arith.mulf %181, %180 : vector<32x64xf32>
    %183 = math.tanh %182 : vector<32x64xf32>
    %cst_81 = arith.constant 1.000000e+00 : f32
    %184 = vector.broadcast %cst_81 : f32 to vector<32x64xf32>
    %185 = arith.addf %184, %183 : vector<32x64xf32>
    %cst_82 = arith.constant 5.000000e-01 : f32
    %186 = vector.broadcast %cst_82 : f32 to vector<32x64xf32>
    %187 = arith.mulf %186, %185 : vector<32x64xf32>
    %188 = arith.mulf %175, %187 : vector<32x64xf32>
    %cst_83 = arith.constant dense<0.000000e+00> : vector<32x32xf32>
    %189 = tpu.matmul %188, %169, %cst_83 {dimension_numbers = #tpu.dot_dimension_numbers<[1], [0], [0], [1], [0, 0, 1, 1], [], []>} : vector<32x64xf32>, vector<64x32xf32>, vector<32x32xf32> -> vector<32x32xf32>
    %190 = vector.broadcast %172 : vector<1x32xf32> to vector<32x32xf32>
    %191 = arith.addf %189, %190 : vector<32x32xf32>
    %192 = arith.addf %160, %191 : vector<32x32xf32>
    %c6_i32 = arith.constant 6 : i32
    %cst_84 = arith.constant dense<0.000000e+00> : vector<32xf32>
    %193 = vector.multi_reduction <add>, %192, %cst_84 [1] : vector<32x32xf32> to vector<32xf32>
    %194 = vector.shape_cast %193 : vector<32xf32> to vector<32x1xf32>
    %cst_85 = arith.constant 3.200000e+01 : f32
    %195 = vector.broadcast %cst_85 : f32 to vector<32x1xf32>
    %196 = arith.divf %194, %195 : vector<32x1xf32>
    %197 = vector.broadcast %196 : vector<32x1xf32> to vector<32x32xf32>
    %198 = arith.subf %192, %197 : vector<32x32xf32>
    %199 = arith.mulf %198, %198 : vector<32x32xf32>
    %cst_86 = arith.constant dense<0.000000e+00> : vector<32xf32>
    %200 = vector.multi_reduction <add>, %199, %cst_86 [1] : vector<32x32xf32> to vector<32xf32>
    %201 = vector.shape_cast %200 : vector<32xf32> to vector<32x1xf32>
    %cst_87 = arith.constant 3.200000e+01 : f32
    %202 = vector.broadcast %cst_87 : f32 to vector<32x1xf32>
    %203 = arith.divf %201, %202 : vector<32x1xf32>
    %204 = vector.broadcast %196 : vector<32x1xf32> to vector<32x32xf32>
    %205 = arith.subf %192, %204 : vector<32x32xf32>
    %cst_88 = arith.constant 9.99999974E-6 : f32
    %206 = vector.broadcast %cst_88 : f32 to vector<32x1xf32>
    %207 = arith.addf %203, %206 : vector<32x1xf32>
    %208 = math.rsqrt %207 : vector<32x1xf32>
    %209 = vector.broadcast %208 : vector<32x1xf32> to vector<32x32xf32>
    %210 = arith.mulf %205, %209 : vector<32x32xf32>
    %c0_89 = arith.constant 0 : index
    %c0_90 = arith.constant 0 : index
    %211 = vector.load %arg5[%c0_89, %c0_90] : memref<1x32xf32, #tpu.memory_space<vmem>>, vector<1x32xf32>
    %212 = vector.broadcast %211 : vector<1x32xf32> to vector<32x32xf32>
    %213 = arith.mulf %210, %212 : vector<32x32xf32>
    %c0_91 = arith.constant 0 : index
    %c0_92 = arith.constant 0 : index
    %214 = vector.load %arg6[%c0_91, %c0_92] : memref<1x32xf32, #tpu.memory_space<vmem>>, vector<1x32xf32>
    %215 = vector.broadcast %214 : vector<1x32xf32> to vector<32x32xf32>
    %216 = arith.addf %213, %215 : vector<32x32xf32>
    %c0_93 = arith.constant 0 : index
    %c0_94 = arith.constant 0 : index
    %217 = vector.load %arg7[%c0_93, %c0_94] : memref<32x32xf32, #tpu.memory_space<vmem>>, vector<32x32xf32>
    tpu.vector_store %arg7[%c0_93, %c0_94], %216 {strides = array<i32>} : memref<32x32xf32, #tpu.memory_space<vmem>>, vector<32x32xf32>,
    return
  }
}

</mosaic_0001>

<bundles_post_ra>
// kernel: tpu_custom_call.1
= control target key start
LH: loop header
LB: loop body
LE: loop exit
PB: predicated region body
PF: predicated region fallthrough
CT: control target
= control target key end

     0   :  { %vm51_vm0 = vcmask 261120   ;;  %s2729_s0 = inlined_call_operand.vmem [shape: f32[32,32], index: 0, kind: input, shape index: {}]   ;;  %s2730_s1 = inlined_call_operand.vmem [shape: f32[6,32,64], index: 1, kind: input, shape index: {}]   ;;  %s2731_s2 = inlined_call_operand.vmem [shape: f32[6,1,64], index: 2, kind: input, shape index: {}]   ;;  %s2732_s3 = inlined_call_operand.vmem [shape: f32[6,64,32], index: 3, kind: input, shape index: {}]   ;;  %s2733_s4 = inlined_call_operand.vmem [shape: f32[6,1,32], index: 4, kind: input, shape index: {}]   ;;  %s2734_s5 = inlined_call_operand.vmem [shape: f32[1,32], index: 5, kind: input, shape index: {}]   ;;  %s2735_s6 = inlined_call_operand.vmem [shape: f32[1,32], index: 6, kind: input, shape index: {}]   ;;  %s2736_s7 = inlined_call_operand.hbm [shape: f32[32,32], index: 7, kind: output, shape index: {}]  }
   0x1   :  { %v34_v0 = vld [vmem:[%s2730_s1 + $0x18] sm:$0xff]  ;;  %v33_v1 = vld [vmem:[%s2730_s1 + $0x10] sm:$0xff]  ;;  %v2309_v2 = vld [vmem:[%s2729_s0] sm:$0xff] }
   0x2   :  { %1960 = vmatprep.subr.mxu1 %v34_v0  ;;  %v32_v3 = vld [vmem:[%s2730_s1 + $0x8] sm:$0xff]  ;;  %1968 = vmatprep.mubr.msk.f32.mxu1 %vm51_vm0, %v2309_v2 }
   0x3   :  { %1961 = vmatpush3.msra.mxu1 %v34_v0 }
   0x4   :  { %12 = vsyncpa [#allocation3], 0  ;;  %1962 = vmatprep.subr.mxu1 %v33_v1  ;;  %v31_v4 = vld [vmem:[%s2730_s1] sm:$0xff]  ;;  %v2322_v5 = vld [vmem:[%s2729_s0 + $0x8] sm:$0xff]  ;;  %vm191_vm1 = vcmask 523264  }
   0x5   :  { %1963 = vmatpush3.msra.mxu1 %v33_v1  ;;  %v2327_v6 = vld [vmem:[%s2729_s0 + $0x10] sm:$0xff]  ;;  %v2336_v7 = vld [vmem:[%s2729_s0 + $0x18] sm:$0xff]  ;;  %v41_v10 = vld [vmem:[%s2732_s3 + $0x28] sm:$0xff] }
   0x6   :  { %1964 = vmatprep.subr.mxu1 %v32_v3  ;;  %v43_v8 = vld [vmem:[%s2732_s3 + $0x38] sm:$0xff]  ;;  %v42_v9 = vld [vmem:[%s2732_s3 + $0x30] sm:$0xff]  ;;  %v40_v11 = vld [vmem:[%s2732_s3 + $0x20] sm:$0xff] }
   0x7   :  { %1965 = vmatpush3.msra.mxu1 %v32_v3  ;;  %v39_v12 = vld [vmem:[%s2732_s3 + $0x18] sm:$0xff]  ;;  %v38_v13 = vld [vmem:[%s2732_s3 + $0x10] sm:$0xff]  ;;  %v37_v14 = vld [vmem:[%s2732_s3 + $0x8] sm:$0xff] }
   0x8   :  { %1966 = vmatprep.subr.mxu1 %v31_v4  ;;  %v36_v15 = vld [vmem:[%s2732_s3] sm:$0xff]  ;;  %v1721_v61 = vld [vmem:[%s2730_s1 + $0x38] sm:$0xff]  ;;  %v1720_v62 = vld [vmem:[%s2730_s1 + $0x30] sm:$0xff] }
   0x9   :  { %1967 = vmatpush3.msra.mxu1 %v31_v4  ;;  %v1708_v16 = vld [vmem:[%s2731_s2] ss:$0 sm:$0xff]  ;;  %1996 = vmatprep.subr.mxu0 %v1721_v61  ;;  %v1719_v63 = vld [vmem:[%s2730_s1 + $0x28] sm:$0xff] }
   0xa   :  { %1969 = vmatmul.mubr.msk.f32.vlgmr.msra.gmra.mxu1 %vm51_vm0, %v2322_v5  ;;  %1974 = vmatprep.subr.mxu1 %v43_v8  ;;  %v1718_v0 = vld [vmem:[%s2730_s1 + $0x20] sm:$0xff] }
   0xb   :  { %1971 = vmatprep.mubr.msk.f32.mxu1 %vm51_vm0, %v2327_v6  ;;  %1975 = vmatpush3.msra.mxu1 %v43_v8  ;;  %v1713_v1 = vld [vmem:[%s2733_s4] ss:$0 sm:$0xff] }
   0xc   :  { %1976 = vmatprep.subr.mxu1 %v42_v9  ;;  %1997 = vmatpush3.msra.mxu0 %v1721_v61 }
   0xd   :  { %1977 = vmatpush3.msra.mxu1 %v42_v9  ;;  %1998 = vmatprep.subr.mxu0 %v1720_v62 }
   0xe   :  { %1972 = vmatmul.mubr.msk.f32.gmra.mxu1 %vm51_vm0, %v2336_v7  ;;  %1978 = vmatprep.subr.mxu1 %v41_v10 }
   0xf   :  { %1979 = vmatpush3.msra.mxu1 %v41_v10  ;;  %1999 = vmatpush3.msra.mxu0 %v1720_v62 }
  0x10   :  { %1980 = vmatprep.subr.mxu1 %v40_v11  ;;  %2000 = vmatprep.subr.mxu0 %v1719_v63 }
  0x11   :  { %1981 = vmatpush3.msra.mxu1 %v40_v11  ;;  %2001 = vmatpush3.msra.mxu0 %v1719_v63 }
  0x12   :  { %1982 = vmatprep.subr.mxu1 %v39_v12  ;;  %2002 = vmatprep.subr.mxu0 %v1718_v0 }
  0x13   :  { %1983 = vmatpush3.msra.mxu1 %v39_v12  ;;  %2003 = vmatpush3.msra.mxu0 %v1718_v0 }
  0x14   :  { %1984 = vmatprep.subr.mxu1 %v38_v13 }
  0x15   :  { %1985 = vmatpush3.msra.mxu1 %v38_v13 }
  0x16   :  { %1986 = vmatprep.subr.mxu1 %v37_v14 }
  0x17   :  { %1987 = vmatpush3.msra.mxu1 %v37_v14 }
  0x18   :  { %1988 = vmatprep.subr.mxu1 %v36_v15 }
  0x19   :  { %1989 = vmatpush3.msra.mxu1 %v36_v15 }
  0xca   :  { %v1970_v17 = vpop.f32.mrf.mxu1 }
  0xcb   :  { %v136_v18 = vadd.f32 %v1970_v17, %v1708_v16 }
  0xcc   :  { %v130_v19 = vpop.f32.mrf.mxu1 }
  0xcd   :  { %v150_v20 = vmul.f32 %v136_v18, %v136_v18  ;;  %v131_v21 = vadd.f32 %v1708_v16, %v130_v19  ;;  %v1725_v19 = vld [vmem:[%s2732_s3 + $0x50] sm:$0xff] }
  0xce   :  { %v1973_v22 = vpop.f32.mrf.mxu1 }
  0xcf   :  { %v154_v23 = vmul.f32 %v150_v20, %v136_v18  ;;  %v149_v24 = vmul.f32 %v131_v21, %v131_v21  ;;  %v146_v25 = vadd.f32 %v1973_v22, %v1708_v16  ;;  %v1724_v20 = vld [vmem:[%s2732_s3 + $0x48] sm:$0xff]  ;;  %v1745_v22 = vld [vmem:[%s2730_s1 + $0x58] sm:$0xff] }
  0xd0   :  { %v140_v26 = vpop.f32.mrf.mxu1  ;;  %2032 = vmatprep.subr.mxu1 %v1745_v22 }
  0xd1   :  { %v158_v27 = vmul.f32 0.044715, %v154_v23  ;;  %v153_v28 = vmul.f32 %v149_v24, %v131_v21  ;;  %v152_v29 = vmul.f32 %v146_v25, %v146_v25  ;;  %v141_v30 = vadd.f32 %v1708_v16, %v140_v26  ;;  %v1732_v23 = vld [vmem:[%s2731_s2 + $0x1] ss:$0 sm:$0xff] }
  0xd3   :  { %v162_v31 = vadd.f32 %v158_v27, %v136_v18  ;;  %v157_v32 = vmul.f32 0.044715, %v153_v28  ;;  %v156_v33 = vmul.f32 %v152_v29, %v146_v25  ;;  %v151_v34 = vmul.f32 %v141_v30, %v141_v30 }
  0xd5   :  { %v166_v35 = vmul.f32 0.7978846, %v162_v31  ;;  %v161_v36 = vadd.f32 %v157_v32, %v131_v21  ;;  %v160_v37 = vmul.f32 0.044715, %v156_v33  ;;  %v155_v38 = vmul.f32 %v151_v34, %v141_v30 }
  0xd7   :  { %2179 = vtanh.f32 %v166_v35  ;;  %v165_v39 = vmul.f32 0.7978846, %v161_v36  ;;  %v164_v40 = vadd.f32 %v160_v37, %v146_v25  ;;  %v159_v41 = vmul.f32 0.044715, %v155_v38 }
  0xd9   :  { %2181 = vtanh.f32 %v165_v39  ;;  %v168_v42 = vmul.f32 0.7978846, %v164_v40  ;;  %v163_v43 = vadd.f32 %v159_v41, %v141_v30 }
  0xdb   :  { %2183 = vtanh.f32 %v168_v42  ;;  %v167_v44 = vmul.f32 0.7978846, %v163_v43 }
  0xdd   :  { %2185 = vtanh.f32 %v167_v44 }
  0xe4   :  { %v2180_v45 = vpop.eup %2179 }
  0xe5   :  { %v174_v46 = vadd.f32 1.0, %v2180_v45 }
  0xe6   :  { %v2182_v47 = vpop.eup %2181 }
  0xe7   :  { %v173_v48 = vadd.f32 1.0, %v2182_v47  ;;  %v178_v50 = vmul.f32 0.5, %v174_v46 }
  0xe8   :  { %v2184_v49 = vpop.eup %2183 }
  0xe9   :  { %v177_v51 = vmul.f32 0.5, %v173_v48  ;;  %v176_v52 = vadd.f32 1.0, %v2184_v49  ;;  %v182_v56 = vmul.f32 %v178_v50, %v136_v18  ;;  %v1726_v18 = vld [vmem:[%s2732_s3 + $0x58] sm:$0xff] }
  0xea   :  { %v2186_v53 = vpop.eup %2185 }
  0xeb   :  { %v181_v54 = vmul.f32 %v177_v51, %v131_v21  ;;  %v175_v55 = vadd.f32 1.0, %v2186_v53  ;;  %v180_v57 = vmul.f32 0.5, %v176_v52  ;;  %v1723_v21 = vld [vmem:[%s2732_s3 + $0x40] sm:$0xff] }
  0xed   :  { %1990 = vmatprep.mubr.msk.f32.mxu1 %vm191_vm1, %v181_v54  ;;  %v179_v58 = vmul.f32 0.5, %v175_v55  ;;  %v184_v60 = vmul.f32 %v180_v57, %v146_v25 }
  0xee   :  { %1991 = vmatmul.mubr.msk.f32.vlgmr.msra.gmra.mxu1 %vm191_vm1, %v182_v56 }
  0xef   :  { %v183_v59 = vmul.f32 %v179_v58, %v141_v30  ;;  %2033 = vmatpush3.msra.mxu1 %v1745_v22 }
  0xf1   :  { %1993 = vmatprep.mubr.msk.f32.mxu1 %vm191_vm1, %v183_v59 }
  0xf2   :  { %1994 = vmatmul.mubr.msk.f32.gmra.mxu1 %vm191_vm1, %v184_v60 }
 0x1ae   :  { %v1992_v3 = vpop.f32.mrf.mxu1 }
 0x1af   :  { %v276_v4 = vadd.f32 %v1992_v3, %v1713_v1 }
 0x1b0   :  { %v270_v8 = vpop.f32.mrf.mxu1 }
 0x1b1   :  { %v271_v9 = vadd.f32 %v1713_v1, %v270_v8  ;;  %v2390_v12 = vadd.f32 %v276_v4, %v2322_v5  ;;  %v1729_v5 = vld [vmem:[%s2732_s3 + $0x70] sm:$0xff] }
 0x1b2   :  { %v1995_v10 = vpop.f32.mrf.mxu1  ;;  %v1744_v8 = vld [vmem:[%s2730_s1 + $0x50] sm:$0xff] }
 0x1b3   :  { %v2387_v11 = vadd.f32 %v271_v9, %v2309_v2  ;;  %v286_v13 = vadd.f32 %v1995_v10, %v1713_v1  ;;  %v1730_v2 = vld [vmem:[%s2732_s3 + $0x78] sm:$0xff]  ;;  %2034 = vmatprep.subr.mxu1 %v1744_v8  ;;  %v1743_v9 = vld [vmem:[%s2730_s1 + $0x48] sm:$0xff]  ;;  %v1742_v10 = vld [vmem:[%s2730_s1 + $0x40] sm:$0xff] }
 0x1b4   :  { %v280_v14 = vpop.f32.mrf.mxu1  ;;  %2010 = vmatprep.subr.mxu0 %v1730_v2  ;;  %2035 = vmatpush3.msra.mxu1 %v1744_v8 }
 0x1b5   :  { %v281_v15 = vadd.f32 %v1713_v1, %v280_v14  ;;  %2004 = vmatprep.mubr.msk.f32.mxu0 %vm51_vm0, %v2387_v11  ;;  %v2400_v17 = vadd.f32 %v286_v13, %v2336_v7  ;;  %v1727_v7 = vld [vmem:[%s2732_s3 + $0x60] sm:$0xff]  ;;  %2036 = vmatprep.subr.mxu1 %v1743_v9 }
 0x1b6   :  { %2005 = vmatmul.mubr.msk.f32.vlgmr.msra.gmra.mxu0 %vm51_vm0, %v2390_v12  ;;  %2037 = vmatpush3.msra.mxu1 %v1743_v9  ;;  %v1737_v13 = vld [vmem:[%s2733_s4 + $0x1] ss:$0 sm:$0xff] }
 0x1b7   :  { %v2397_v16 = vadd.f32 %v281_v15, %v2327_v6  ;;  %2011 = vmatpush3.msra.mxu0 %v1730_v2  ;;  %v1728_v6 = vld [vmem:[%s2732_s3 + $0x68] sm:$0xff]  ;;  %2038 = vmatprep.subr.mxu1 %v1742_v10 }
 0x1b8   :  { %2012 = vmatprep.subr.mxu0 %v1729_v5  ;;  %2039 = vmatpush3.msra.mxu1 %v1742_v10 }
 0x1b9   :  { %2007 = vmatprep.mubr.msk.f32.mxu0 %vm51_vm0, %v2397_v16  ;;  %2013 = vmatpush3.msra.mxu0 %v1729_v5 }
 0x1ba   :  { %2008 = vmatmul.mubr.msk.f32.gmra.mxu0 %vm51_vm0, %v2400_v17  ;;  %2014 = vmatprep.subr.mxu0 %v1728_v6 }
 0x1bb   :  { %2015 = vmatpush3.msra.mxu0 %v1728_v6 }
 0x1bc   :  { %2016 = vmatprep.subr.mxu0 %v1727_v7 }
 0x1bd   :  { %2017 = vmatpush3.msra.mxu0 %v1727_v7 }
 0x1be   :  { %2018 = vmatprep.subr.mxu0 %v1726_v18 }
 0x1bf   :  { %2019 = vmatpush3.msra.mxu0 %v1726_v18 }
 0x1c0   :  { %2020 = vmatprep.subr.mxu0 %v1725_v19 }
 0x1c1   :  { %2021 = vmatpush3.msra.mxu0 %v1725_v19 }
 0x1c2   :  { %2022 = vmatprep.subr.mxu0 %v1724_v20 }
 0x1c3   :  { %2023 = vmatpush3.msra.mxu0 %v1724_v20 }
 0x1c4   :  { %2024 = vmatprep.subr.mxu0 %v1723_v21 }
 0x1c5   :  { %2025 = vmatpush3.msra.mxu0 %v1723_v21 }
 0x276   :  { %v2006_v24 = vpop.f32.mrf.mxu0 }
 0x277   :  { %v401_v25 = vadd.f32 %v2006_v24, %v1732_v23  ;;  %v1750_v24 = vld [vmem:[%s2732_s3 + $0x98] sm:$0xff] }
 0x278   :  { %v395_v26 = vpop.f32.mrf.mxu0 }
 0x279   :  { %v415_v27 = vmul.f32 %v401_v25, %v401_v25  ;;  %v396_v28 = vadd.f32 %v1732_v23, %v395_v26  ;;  %v1748_v26 = vld [vmem:[%s2732_s3 + $0x88] sm:$0xff] }
 0x27a   :  { %v2009_v29 = vpop.f32.mrf.mxu0 }
 0x27b   :  { %v419_v30 = vmul.f32 %v415_v27, %v401_v25  ;;  %v414_v31 = vmul.f32 %v396_v28, %v396_v28  ;;  %v411_v32 = vadd.f32 %v2009_v29, %v1732_v23  ;;  %v1747_v27 = vld [vmem:[%s2732_s3 + $0x80] sm:$0xff] }
 0x27c   :  { %v405_v33 = vpop.f32.mrf.mxu0  ;;  %v1756_v29 = vld [vmem:[%s2731_s2 + $0x2] ss:$0 sm:$0xff] }
 0x27d   :  { %v423_v34 = vmul.f32 0.044715, %v419_v30  ;;  %v418_v35 = vmul.f32 %v414_v31, %v396_v28  ;;  %v417_v36 = vmul.f32 %v411_v32, %v411_v32  ;;  %v406_v37 = vadd.f32 %v1732_v23, %v405_v33 }
 0x27f   :  { %v427_v38 = vadd.f32 %v423_v34, %v401_v25  ;;  %v422_v39 = vmul.f32 0.044715, %v418_v35  ;;  %v421_v40 = vmul.f32 %v417_v36, %v411_v32  ;;  %v416_v41 = vmul.f32 %v406_v37, %v406_v37 }
 0x281   :  { %v431_v42 = vmul.f32 0.7978846, %v427_v38  ;;  %v426_v43 = vadd.f32 %v422_v39, %v396_v28  ;;  %v425_v44 = vmul.f32 0.044715, %v421_v40  ;;  %v420_v45 = vmul.f32 %v416_v41, %v406_v37 }
 0x283   :  { %2187 = vtanh.f32 %v431_v42  ;;  %v430_v46 = vmul.f32 0.7978846, %v426_v43  ;;  %v429_v47 = vadd.f32 %v425_v44, %v411_v32  ;;  %v424_v48 = vmul.f32 0.044715, %v420_v45 }
 0x285   :  { %2189 = vtanh.f32 %v430_v46  ;;  %v433_v49 = vmul.f32 0.7978846, %v429_v47  ;;  %v428_v50 = vadd.f32 %v424_v48, %v406_v37 }
 0x287   :  { %2191 = vtanh.f32 %v433_v49  ;;  %v432_v51 = vmul.f32 0.7978846, %v428_v50 }
 0x289   :  { %2193 = vtanh.f32 %v432_v51 }
 0x290   :  { %v2188_v52 = vpop.eup %2187 }
 0x291   :  { %v439_v53 = vadd.f32 1.0, %v2188_v52 }
 0x292   :  { %v2190_v54 = vpop.eup %2189 }
 0x293   :  { %v438_v55 = vadd.f32 1.0, %v2190_v54  ;;  %v443_v57 = vmul.f32 0.5, %v439_v53 }
 0x294   :  { %v2192_v56 = vpop.eup %2191 }
 0x295   :  { %v442_v58 = vmul.f32 0.5, %v438_v55  ;;  %v441_v59 = vadd.f32 1.0, %v2192_v56  ;;  %v447_v63 = vmul.f32 %v443_v57, %v401_v25  ;;  %v1749_v25 = vld [vmem:[%s2732_s3 + $0x90] sm:$0xff] }
 0x296   :  { %v2194_v60 = vpop.eup %2193 }
 0x297   :  { %v446_v61 = vmul.f32 %v442_v58, %v396_v28  ;;  %v440_v62 = vadd.f32 1.0, %v2194_v60  ;;  %v445_v0 = vmul.f32 0.5, %v441_v59  ;;  %v1769_v28 = vld [vmem:[%s2730_s1 + $0x78] sm:$0xff] }
 0x298   :  { %2068 = vmatprep.subr.mxu0 %v1769_v28 }
 0x299   :  { %2026 = vmatprep.mubr.msk.f32.mxu0 %vm191_vm1, %v446_v61  ;;  %v444_v1 = vmul.f32 0.5, %v440_v62  ;;  %v449_v4 = vmul.f32 %v445_v0, %v411_v32 }
 0x29a   :  { %2027 = vmatmul.mubr.msk.f32.vlgmr.msra.gmra.mxu0 %vm191_vm1, %v447_v63 }
 0x29b   :  { %v448_v3 = vmul.f32 %v444_v1, %v406_v37  ;;  %2069 = vmatpush3.msra.mxu0 %v1769_v28 }
 0x29d   :  { %2029 = vmatprep.mubr.msk.f32.mxu0 %vm191_vm1, %v448_v3 }
 0x29e   :  { %2030 = vmatmul.mubr.msk.f32.gmra.mxu0 %vm191_vm1, %v449_v4 }
 0x35a   :  { %v2028_v14 = vpop.f32.mrf.mxu0 }
 0x35b   :  { %v540_v15 = vadd.f32 %v2028_v14, %v1737_v13 }
 0x35c   :  { %v534_v2 = vpop.f32.mrf.mxu0 }
 0x35d   :  { %v535_v5 = vadd.f32 %v1737_v13, %v534_v2  ;;  %v2456_v18 = vadd.f32 %v540_v15, %v2390_v12  ;;  %v1753_v12 = vld [vmem:[%s2732_s3 + $0xb0] sm:$0xff] }
 0x35e   :  { %v2031_v6 = vpop.f32.mrf.mxu0  ;;  %v1768_v2 = vld [vmem:[%s2730_s1 + $0x70] sm:$0xff] }
 0x35f   :  { %v2453_v7 = vadd.f32 %v535_v5, %v2387_v11  ;;  %v550_v19 = vadd.f32 %v2031_v6, %v1737_v13  ;;  %v1754_v11 = vld [vmem:[%s2732_s3 + $0xb8] sm:$0xff]  ;;  %2070 = vmatprep.subr.mxu0 %v1768_v2  ;;  %v1767_v5 = vld [vmem:[%s2730_s1 + $0x68] sm:$0xff]  ;;  %v1766_v6 = vld [vmem:[%s2730_s1 + $0x60] sm:$0xff] }
 0x360   :  { %v544_v20 = vpop.f32.mrf.mxu0  ;;  %2046 = vmatprep.subr.mxu1 %v1754_v11  ;;  %2071 = vmatpush3.msra.mxu0 %v1768_v2 }
 0x361   :  { %v545_v21 = vadd.f32 %v1737_v13, %v544_v20  ;;  %2040 = vmatprep.mubr.msk.f32.mxu1 %vm51_vm0, %v2453_v7  ;;  %v2466_v23 = vadd.f32 %v550_v19, %v2400_v17  ;;  %v1751_v17 = vld [vmem:[%s2732_s3 + $0xa0] sm:$0xff]  ;;  %2072 = vmatprep.subr.mxu0 %v1767_v5 }
 0x362   :  { %2041 = vmatmul.mubr.msk.f32.vlgmr.msra.gmra.mxu1 %vm51_vm0, %v2456_v18  ;;  %2073 = vmatpush3.msra.mxu0 %v1767_v5  ;;  %v1761_v19 = vld [vmem:[%s2733_s4 + $0x2] ss:$0 sm:$0xff] }
 0x363   :  { %v2463_v22 = vadd.f32 %v545_v21, %v2397_v16  ;;  %2047 = vmatpush3.msra.mxu1 %v1754_v11  ;;  %v1752_v16 = vld [vmem:[%s2732_s3 + $0xa8] sm:$0xff]  ;;  %2074 = vmatprep.subr.mxu0 %v1766_v6 }
 0x364   :  { %2048 = vmatprep.subr.mxu1 %v1753_v12  ;;  %2075 = vmatpush3.msra.mxu0 %v1766_v6 }
 0x365   :  { %2043 = vmatprep.mubr.msk.f32.mxu1 %vm51_vm0, %v2463_v22  ;;  %2049 = vmatpush3.msra.mxu1 %v1753_v12 }
 0x366   :  { %2044 = vmatmul.mubr.msk.f32.gmra.mxu1 %vm51_vm0, %v2466_v23  ;;  %2050 = vmatprep.subr.mxu1 %v1752_v16 }
 0x367   :  { %2051 = vmatpush3.msra.mxu1 %v1752_v16 }
 0x368   :  { %2052 = vmatprep.subr.mxu1 %v1751_v17 }
 0x369   :  { %2053 = vmatpush3.msra.mxu1 %v1751_v17 }
 0x36a   :  { %2054 = vmatprep.subr.mxu1 %v1750_v24 }
 0x36b   :  { %2055 = vmatpush3.msra.mxu1 %v1750_v24 }
 0x36c   :  { %2056 = vmatprep.subr.mxu1 %v1749_v25 }
 0x36d   :  { %2057 = vmatpush3.msra.mxu1 %v1749_v25 }
 0x36e   :  { %2058 = vmatprep.subr.mxu1 %v1748_v26 }
 0x36f   :  { %2059 = vmatpush3.msra.mxu1 %v1748_v26 }
 0x370   :  { %2060 = vmatprep.subr.mxu1 %v1747_v27 }
 0x371   :  { %2061 = vmatpush3.msra.mxu1 %v1747_v27 }
 0x422   :  { %v2042_v30 = vpop.f32.mrf.mxu1 }
 0x423   :  { %v665_v31 = vadd.f32 %v2042_v30, %v1756_v29  ;;  %v1774_v30 = vld [vmem:[%s2732_s3 + $0xd8] sm:$0xff] }
 0x424   :  { %v659_v32 = vpop.f32.mrf.mxu1 }
 0x425   :  { %v679_v33 = vmul.f32 %v665_v31, %v665_v31  ;;  %v660_v34 = vadd.f32 %v1756_v29, %v659_v32  ;;  %v1772_v32 = vld [vmem:[%s2732_s3 + $0xc8] sm:$0xff] }
 0x426   :  { %v2045_v35 = vpop.f32.mrf.mxu1 }
 0x427   :  { %v683_v36 = vmul.f32 %v679_v33, %v665_v31  ;;  %v678_v37 = vmul.f32 %v660_v34, %v660_v34  ;;  %v675_v38 = vadd.f32 %v2045_v35, %v1756_v29  ;;  %v1771_v33 = vld [vmem:[%s2732_s3 + $0xc0] sm:$0xff] }
 0x428   :  { %v669_v39 = vpop.f32.mrf.mxu1  ;;  %v1780_v35 = vld [vmem:[%s2731_s2 + $0x3] ss:$0 sm:$0xff] }
 0x429   :  { %v687_v40 = vmul.f32 0.044715, %v683_v36  ;;  %v682_v41 = vmul.f32 %v678_v37, %v660_v34  ;;  %v681_v42 = vmul.f32 %v675_v38, %v675_v38  ;;  %v670_v43 = vadd.f32 %v1756_v29, %v669_v39 }
 0x42b   :  { %v691_v44 = vadd.f32 %v687_v40, %v665_v31  ;;  %v686_v45 = vmul.f32 0.044715, %v682_v41  ;;  %v685_v46 = vmul.f32 %v681_v42, %v675_v38  ;;  %v680_v47 = vmul.f32 %v670_v43, %v670_v43 }
 0x42d   :  { %v695_v48 = vmul.f32 0.7978846, %v691_v44  ;;  %v690_v49 = vadd.f32 %v686_v45, %v660_v34  ;;  %v689_v50 = vmul.f32 0.044715, %v685_v46  ;;  %v684_v51 = vmul.f32 %v680_v47, %v670_v43 }
 0x42f   :  { %2195 = vtanh.f32 %v695_v48  ;;  %v694_v52 = vmul.f32 0.7978846, %v690_v49  ;;  %v693_v53 = vadd.f32 %v689_v50, %v675_v38  ;;  %v688_v54 = vmul.f32 0.044715, %v684_v51 }
 0x431   :  { %2197 = vtanh.f32 %v694_v52  ;;  %v697_v55 = vmul.f32 0.7978846, %v693_v53  ;;  %v692_v56 = vadd.f32 %v688_v54, %v670_v43 }
 0x433   :  { %2199 = vtanh.f32 %v697_v55  ;;  %v696_v57 = vmul.f32 0.7978846, %v692_v56 }
 0x435   :  { %2201 = vtanh.f32 %v696_v57 }
 0x43c   :  { %v2196_v58 = vpop.eup %2195 }
 0x43d   :  { %v703_v59 = vadd.f32 1.0, %v2196_v58 }
 0x43e   :  { %v2198_v60 = vpop.eup %2197 }
 0x43f   :  { %v702_v61 = vadd.f32 1.0, %v2198_v60  ;;  %v707_v63 = vmul.f32 0.5, %v703_v59 }
 0x440   :  { %v2200_v62 = vpop.eup %2199 }
 0x441   :  { %v706_v0 = vmul.f32 0.5, %v702_v61  ;;  %v705_v1 = vadd.f32 1.0, %v2200_v62  ;;  %v711_v9 = vmul.f32 %v707_v63, %v665_v31  ;;  %v1773_v31 = vld [vmem:[%s2732_s3 + $0xd0] sm:$0xff] }
 0x442   :  { %v2202_v3 = vpop.eup %2201 }
 0x443   :  { %v710_v4 = vmul.f32 %v706_v0, %v660_v34  ;;  %v704_v8 = vadd.f32 1.0, %v2202_v3  ;;  %v709_v10 = vmul.f32 0.5, %v705_v1  ;;  %v1793_v34 = vld [vmem:[%s2730_s1 + $0x98] sm:$0xff] }
 0x444   :  { %2104 = vmatprep.subr.mxu1 %v1793_v34 }
 0x445   :  { %2062 = vmatprep.mubr.msk.f32.mxu1 %vm191_vm1, %v710_v4  ;;  %v708_v13 = vmul.f32 0.5, %v704_v8  ;;  %v713_v15 = vmul.f32 %v709_v10, %v675_v38 }
 0x446   :  { %2063 = vmatmul.mubr.msk.f32.vlgmr.msra.gmra.mxu1 %vm191_vm1, %v711_v9 }
 0x447   :  { %v712_v14 = vmul.f32 %v708_v13, %v670_v43  ;;  %2105 = vmatpush3.msra.mxu1 %v1793_v34 }
 0x449   :  { %2065 = vmatprep.mubr.msk.f32.mxu1 %vm191_vm1, %v712_v14 }
 0x44a   :  { %2066 = vmatmul.mubr.msk.f32.gmra.mxu1 %vm191_vm1, %v713_v15 }
 0x506   :  { %v2064_v20 = vpop.f32.mrf.mxu1 }
 0x507   :  { %v804_v21 = vadd.f32 %v2064_v20, %v1761_v19 }
 0x508   :  { %v798_v11 = vpop.f32.mrf.mxu1 }
 0x509   :  { %v799_v12 = vadd.f32 %v1761_v19, %v798_v11  ;;  %v2522_v24 = vadd.f32 %v804_v21, %v2456_v18  ;;  %v1777_v18 = vld [vmem:[%s2732_s3 + $0xf0] sm:$0xff] }
 0x50a   :  { %v2067_v16 = vpop.f32.mrf.mxu1  ;;  %v1792_v11 = vld [vmem:[%s2730_s1 + $0x90] sm:$0xff] }
 0x50b   :  { %v2519_v17 = vadd.f32 %v799_v12, %v2453_v7  ;;  %v814_v25 = vadd.f32 %v2067_v16, %v1761_v19  ;;  %v1778_v7 = vld [vmem:[%s2732_s3 + $0xf8] sm:$0xff]  ;;  %2106 = vmatprep.subr.mxu1 %v1792_v11  ;;  %v1791_v12 = vld [vmem:[%s2730_s1 + $0x88] sm:$0xff]  ;;  %v1790_v16 = vld [vmem:[%s2730_s1 + $0x80] sm:$0xff] }
 0x50c   :  { %v808_v26 = vpop.f32.mrf.mxu1  ;;  %2082 = vmatprep.subr.mxu0 %v1778_v7  ;;  %2107 = vmatpush3.msra.mxu1 %v1792_v11 }
 0x50d   :  { %v809_v27 = vadd.f32 %v1761_v19, %v808_v26  ;;  %2076 = vmatprep.mubr.msk.f32.mxu0 %vm51_vm0, %v2519_v17  ;;  %v2532_v29 = vadd.f32 %v814_v25, %v2466_v23  ;;  %v1775_v23 = vld [vmem:[%s2732_s3 + $0xe0] sm:$0xff]  ;;  %2108 = vmatprep.subr.mxu1 %v1791_v12 }
 0x50e   :  { %2077 = vmatmul.mubr.msk.f32.vlgmr.msra.gmra.mxu0 %vm51_vm0, %v2522_v24  ;;  %2109 = vmatpush3.msra.mxu1 %v1791_v12  ;;  %v1785_v25 = vld [vmem:[%s2733_s4 + $0x3] ss:$0 sm:$0xff] }
 0x50f   :  { %v2529_v28 = vadd.f32 %v809_v27, %v2463_v22  ;;  %2083 = vmatpush3.msra.mxu0 %v1778_v7  ;;  %v1776_v22 = vld [vmem:[%s2732_s3 + $0xe8] sm:$0xff]  ;;  %2110 = vmatprep.subr.mxu1 %v1790_v16 }
 0x510   :  { %2084 = vmatprep.subr.mxu0 %v1777_v18  ;;  %2111 = vmatpush3.msra.mxu1 %v1790_v16 }
 0x511   :  { %2079 = vmatprep.mubr.msk.f32.mxu0 %vm51_vm0, %v2529_v28  ;;  %2085 = vmatpush3.msra.mxu0 %v1777_v18 }
 0x512   :  { %2080 = vmatmul.mubr.msk.f32.gmra.mxu0 %vm51_vm0, %v2532_v29  ;;  %2086 = vmatprep.subr.mxu0 %v1776_v22 }
 0x513   :  { %2087 = vmatpush3.msra.mxu0 %v1776_v22 }
 0x514   :  { %2088 = vmatprep.subr.mxu0 %v1775_v23 }
 0x515   :  { %2089 = vmatpush3.msra.mxu0 %v1775_v23 }
 0x516   :  { %2090 = vmatprep.subr.mxu0 %v1774_v30 }
 0x517   :  { %2091 = vmatpush3.msra.mxu0 %v1774_v30 }
 0x518   :  { %2092 = vmatprep.subr.mxu0 %v1773_v31 }
 0x519   :  { %2093 = vmatpush3.msra.mxu0 %v1773_v31 }
 0x51a   :  { %2094 = vmatprep.subr.mxu0 %v1772_v32 }
 0x51b   :  { %2095 = vmatpush3.msra.mxu0 %v1772_v32 }
 0x51c   :  { %2096 = vmatprep.subr.mxu0 %v1771_v33 }
 0x51d   :  { %2097 = vmatpush3.msra.mxu0 %v1771_v33 }
 0x5ce   :  { %v2078_v36 = vpop.f32.mrf.mxu0 }
 0x5cf   :  { %v929_v37 = vadd.f32 %v2078_v36, %v1780_v35  ;;  %v1798_v36 = vld [vmem:[%s2732_s3 + $0x118] sm:$0xff] }
 0x5d0   :  { %v923_v38 = vpop.f32.mrf.mxu0 }
 0x5d1   :  { %v943_v39 = vmul.f32 %v929_v37, %v929_v37  ;;  %v924_v40 = vadd.f32 %v1780_v35, %v923_v38  ;;  %v1796_v38 = vld [vmem:[%s2732_s3 + $0x108] sm:$0xff] }
 0x5d2   :  { %v2081_v41 = vpop.f32.mrf.mxu0 }
 0x5d3   :  { %v947_v42 = vmul.f32 %v943_v39, %v929_v37  ;;  %v942_v43 = vmul.f32 %v924_v40, %v924_v40  ;;  %v939_v44 = vadd.f32 %v2081_v41, %v1780_v35  ;;  %v1795_v39 = vld [vmem:[%s2732_s3 + $0x100] sm:$0xff] }
 0x5d4   :  { %v933_v45 = vpop.f32.mrf.mxu0  ;;  %v1804_v41 = vld [vmem:[%s2731_s2 + $0x4] ss:$0 sm:$0xff] }
 0x5d5   :  { %v951_v46 = vmul.f32 0.044715, %v947_v42  ;;  %v946_v47 = vmul.f32 %v942_v43, %v924_v40  ;;  %v945_v48 = vmul.f32 %v939_v44, %v939_v44  ;;  %v934_v49 = vadd.f32 %v1780_v35, %v933_v45 }
 0x5d7   :  { %v955_v50 = vadd.f32 %v951_v46, %v929_v37  ;;  %v950_v51 = vmul.f32 0.044715, %v946_v47  ;;  %v949_v52 = vmul.f32 %v945_v48, %v939_v44  ;;  %v944_v53 = vmul.f32 %v934_v49, %v934_v49 }
 0x5d9   :  { %v959_v54 = vmul.f32 0.7978846, %v955_v50  ;;  %v954_v55 = vadd.f32 %v950_v51, %v924_v40  ;;  %v953_v56 = vmul.f32 0.044715, %v949_v52  ;;  %v948_v57 = vmul.f32 %v944_v53, %v934_v49 }
 0x5db   :  { %2203 = vtanh.f32 %v959_v54  ;;  %v958_v58 = vmul.f32 0.7978846, %v954_v55  ;;  %v957_v59 = vadd.f32 %v953_v56, %v939_v44  ;;  %v952_v60 = vmul.f32 0.044715, %v948_v57 }
 0x5dd   :  { %2205 = vtanh.f32 %v958_v58  ;;  %v961_v61 = vmul.f32 0.7978846, %v957_v59  ;;  %v956_v62 = vadd.f32 %v952_v60, %v934_v49 }
 0x5df   :  { %2207 = vtanh.f32 %v961_v61  ;;  %v960_v63 = vmul.f32 0.7978846, %v956_v62 }
 0x5e1   :  { %2209 = vtanh.f32 %v960_v63 }
 0x5e8   :  { %v2204_v0 = vpop.eup %2203 }
 0x5e9   :  { %v967_v1 = vadd.f32 1.0, %v2204_v0 }
 0x5ea   :  { %v2206_v3 = vpop.eup %2205 }
 0x5eb   :  { %v966_v4 = vadd.f32 1.0, %v2206_v3  ;;  %v971_v9 = vmul.f32 0.5, %v967_v1 }
 0x5ec   :  { %v2208_v8 = vpop.eup %2207 }
 0x5ed   :  { %v970_v10 = vmul.f32 0.5, %v966_v4  ;;  %v969_v13 = vadd.f32 1.0, %v2208_v8  ;;  %v975_v5 = vmul.f32 %v971_v9, %v929_v37  ;;  %v1797_v37 = vld [vmem:[%s2732_s3 + $0x110] sm:$0xff] }
 0x5ee   :  { %v2210_v14 = vpop.eup %2209 }
 0x5ef   :  { %v974_v15 = vmul.f32 %v970_v10, %v924_v40  ;;  %v968_v2 = vadd.f32 1.0, %v2210_v14  ;;  %v973_v6 = vmul.f32 0.5, %v969_v13  ;;  %v1817_v40 = vld [vmem:[%s2730_s1 + $0xb8] sm:$0xff] }
 0x5f0   :  { %2140 = vmatprep.subr.mxu0 %v1817_v40 }
 0x5f1   :  { %2098 = vmatprep.mubr.msk.f32.mxu0 %vm191_vm1, %v974_v15  ;;  %v972_v19 = vmul.f32 0.5, %v968_v2  ;;  %v977_v21 = vmul.f32 %v973_v6, %v939_v44 }
 0x5f2   :  { %2099 = vmatmul.mubr.msk.f32.vlgmr.msra.gmra.mxu0 %vm191_vm1, %v975_v5 }
 0x5f3   :  { %v976_v20 = vmul.f32 %v972_v19, %v934_v49  ;;  %2141 = vmatpush3.msra.mxu0 %v1817_v40 }
 0x5f5   :  { %2101 = vmatprep.mubr.msk.f32.mxu0 %vm191_vm1, %v976_v20 }
 0x5f6   :  { %2102 = vmatmul.mubr.msk.f32.gmra.mxu0 %vm191_vm1, %v977_v21 }
 0x6b2   :  { %v2100_v26 = vpop.f32.mrf.mxu0 }
 0x6b3   :  { %v1068_v27 = vadd.f32 %v2100_v26, %v1785_v25 }
 0x6b4   :  { %v1062_v7 = vpop.f32.mrf.mxu0 }
 0x6b5   :  { %v1063_v18 = vadd.f32 %v1785_v25, %v1062_v7  ;;  %v2588_v30 = vadd.f32 %v1068_v27, %v2522_v24  ;;  %v1801_v24 = vld [vmem:[%s2732_s3 + $0x130] sm:$0xff] }
 0x6b6   :  { %v2103_v22 = vpop.f32.mrf.mxu0  ;;  %v1816_v7 = vld [vmem:[%s2730_s1 + $0xb0] sm:$0xff] }
 0x6b7   :  { %v2585_v23 = vadd.f32 %v1063_v18, %v2519_v17  ;;  %v1078_v31 = vadd.f32 %v2103_v22, %v1785_v25  ;;  %v1802_v17 = vld [vmem:[%s2732_s3 + $0x138] sm:$0xff]  ;;  %2142 = vmatprep.subr.mxu0 %v1816_v7  ;;  %v1815_v18 = vld [vmem:[%s2730_s1 + $0xa8] sm:$0xff]  ;;  %v1814_v22 = vld [vmem:[%s2730_s1 + $0xa0] sm:$0xff] }
 0x6b8   :  { %v1072_v32 = vpop.f32.mrf.mxu0  ;;  %2118 = vmatprep.subr.mxu1 %v1802_v17  ;;  %2143 = vmatpush3.msra.mxu0 %v1816_v7 }
 0x6b9   :  { %v1073_v33 = vadd.f32 %v1785_v25, %v1072_v32  ;;  %2112 = vmatprep.mubr.msk.f32.mxu1 %vm51_vm0, %v2585_v23  ;;  %v2598_v35 = vadd.f32 %v1078_v31, %v2532_v29  ;;  %v1799_v29 = vld [vmem:[%s2732_s3 + $0x120] sm:$0xff]  ;;  %2144 = vmatprep.subr.mxu0 %v1815_v18 }
 0x6ba   :  { %2113 = vmatmul.mubr.msk.f32.vlgmr.msra.gmra.mxu1 %vm51_vm0, %v2588_v30  ;;  %2145 = vmatpush3.msra.mxu0 %v1815_v18  ;;  %v1809_v31 = vld [vmem:[%s2733_s4 + $0x4] ss:$0 sm:$0xff] }
 0x6bb   :  { %v2595_v34 = vadd.f32 %v1073_v33, %v2529_v28  ;;  %2119 = vmatpush3.msra.mxu1 %v1802_v17  ;;  %v1800_v28 = vld [vmem:[%s2732_s3 + $0x128] sm:$0xff]  ;;  %2146 = vmatprep.subr.mxu0 %v1814_v22 }
 0x6bc   :  { %2120 = vmatprep.subr.mxu1 %v1801_v24  ;;  %2147 = vmatpush3.msra.mxu0 %v1814_v22 }
 0x6bd   :  { %2115 = vmatprep.mubr.msk.f32.mxu1 %vm51_vm0, %v2595_v34  ;;  %2121 = vmatpush3.msra.mxu1 %v1801_v24 }
 0x6be   :  { %2116 = vmatmul.mubr.msk.f32.gmra.mxu1 %vm51_vm0, %v2598_v35  ;;  %2122 = vmatprep.subr.mxu1 %v1800_v28 }
 0x6bf   :  { %2123 = vmatpush3.msra.mxu1 %v1800_v28 }
 0x6c0   :  { %2124 = vmatprep.subr.mxu1 %v1799_v29 }
 0x6c1   :  { %2125 = vmatpush3.msra.mxu1 %v1799_v29 }
 0x6c2   :  { %2126 = vmatprep.subr.mxu1 %v1798_v36 }
 0x6c3   :  { %2127 = vmatpush3.msra.mxu1 %v1798_v36 }
 0x6c4   :  { %2128 = vmatprep.subr.mxu1 %v1797_v37 }
 0x6c5   :  { %2129 = vmatpush3.msra.mxu1 %v1797_v37 }
 0x6c6   :  { %2130 = vmatprep.subr.mxu1 %v1796_v38 }
 0x6c7   :  { %2131 = vmatpush3.msra.mxu1 %v1796_v38 }
 0x6c8   :  { %2132 = vmatprep.subr.mxu1 %v1795_v39 }
 0x6c9   :  { %2133 = vmatpush3.msra.mxu1 %v1795_v39 }
 0x77a   :  { %v2114_v42 = vpop.f32.mrf.mxu1 }
 0x77b   :  { %v1193_v43 = vadd.f32 %v2114_v42, %v1804_v41  ;;  %v1822_v42 = vld [vmem:[%s2732_s3 + $0x158] sm:$0xff] }
 0x77c   :  { %v1187_v44 = vpop.f32.mrf.mxu1 }
 0x77d   :  { %v1207_v45 = vmul.f32 %v1193_v43, %v1193_v43  ;;  %v1188_v46 = vadd.f32 %v1804_v41, %v1187_v44  ;;  %v1820_v44 = vld [vmem:[%s2732_s3 + $0x148] sm:$0xff] }
 0x77e   :  { %v2117_v47 = vpop.f32.mrf.mxu1 }
 0x77f   :  { %v1211_v48 = vmul.f32 %v1207_v45, %v1193_v43  ;;  %v1206_v49 = vmul.f32 %v1188_v46, %v1188_v46  ;;  %v1203_v50 = vadd.f32 %v2117_v47, %v1804_v41  ;;  %v1819_v45 = vld [vmem:[%s2732_s3 + $0x140] sm:$0xff] }
 0x780   :  { %v1197_v51 = vpop.f32.mrf.mxu1 }
 0x781   :  { %v1215_v52 = vmul.f32 0.044715, %v1211_v48  ;;  %v1210_v53 = vmul.f32 %v1206_v49, %v1188_v46  ;;  %v1209_v54 = vmul.f32 %v1203_v50, %v1203_v50  ;;  %v1198_v55 = vadd.f32 %v1804_v41, %v1197_v51 }
 0x783   :  { %v1219_v56 = vadd.f32 %v1215_v52, %v1193_v43  ;;  %v1214_v57 = vmul.f32 0.044715, %v1210_v53  ;;  %v1213_v58 = vmul.f32 %v1209_v54, %v1203_v50  ;;  %v1208_v59 = vmul.f32 %v1198_v55, %v1198_v55 }
 0x785   :  { %v1223_v60 = vmul.f32 0.7978846, %v1219_v56  ;;  %v1218_v61 = vadd.f32 %v1214_v57, %v1188_v46  ;;  %v1217_v62 = vmul.f32 0.044715, %v1213_v58  ;;  %v1212_v63 = vmul.f32 %v1208_v59, %v1198_v55 }
 0x787   :  { %2211 = vtanh.f32 %v1223_v60  ;;  %v1222_v0 = vmul.f32 0.7978846, %v1218_v61  ;;  %v1221_v1 = vadd.f32 %v1217_v62, %v1203_v50  ;;  %v1216_v3 = vmul.f32 0.044715, %v1212_v63 }
 0x789   :  { %2213 = vtanh.f32 %v1222_v0  ;;  %v1225_v4 = vmul.f32 0.7978846, %v1221_v1  ;;  %v1220_v8 = vadd.f32 %v1216_v3, %v1198_v55 }
 0x78b   :  { %2215 = vtanh.f32 %v1225_v4  ;;  %v1224_v9 = vmul.f32 0.7978846, %v1220_v8 }
 0x78d   :  { %2217 = vtanh.f32 %v1224_v9 }
 0x794   :  { %v2212_v10 = vpop.eup %2211 }
 0x795   :  { %v1231_v13 = vadd.f32 1.0, %v2212_v10 }
 0x796   :  { %v2214_v14 = vpop.eup %2213 }
 0x797   :  { %v1230_v15 = vadd.f32 1.0, %v2214_v14  ;;  %v1235_v5 = vmul.f32 0.5, %v1231_v13 }
 0x798   :  { %v2216_v2 = vpop.eup %2215 }
 0x799   :  { %v1234_v6 = vmul.f32 0.5, %v1230_v15  ;;  %v1233_v19 = vadd.f32 1.0, %v2216_v2  ;;  %v1239_v12 = vmul.f32 %v1235_v5, %v1193_v43  ;;  %v1821_v43 = vld [vmem:[%s2732_s3 + $0x150] sm:$0xff] }
 0x79a   :  { %v2218_v20 = vpop.eup %2217 }
 0x79b   :  { %v1238_v21 = vmul.f32 %v1234_v6, %v1188_v46  ;;  %v1232_v11 = vadd.f32 1.0, %v2218_v20  ;;  %v1237_v16 = vmul.f32 0.5, %v1233_v19  ;;  %v1828_v46 = vld [vmem:[%s2731_s2 + $0x5] ss:$0 sm:$0xff] }
 0x79d   :  { %2134 = vmatprep.mubr.msk.f32.mxu1 %vm191_vm1, %v1238_v21  ;;  %v1236_v25 = vmul.f32 0.5, %v1232_v11  ;;  %v1241_v27 = vmul.f32 %v1237_v16, %v1203_v50 }
 0x79e   :  { %2135 = vmatmul.mubr.msk.f32.vlgmr.msra.gmra.mxu1 %vm191_vm1, %v1239_v12 }
 0x79f   :  { %v1240_v26 = vmul.f32 %v1236_v25, %v1198_v55 }
 0x7a1   :  { %2137 = vmatprep.mubr.msk.f32.mxu1 %vm191_vm1, %v1240_v26 }
 0x7a2   :  { %2138 = vmatmul.mubr.msk.f32.gmra.mxu1 %vm191_vm1, %v1241_v27 }
 0x85e   :  { %v2136_v32 = vpop.f32.mrf.mxu1 }
 0x85f   :  { %v1332_v33 = vadd.f32 %v2136_v32, %v1809_v31 }
 0x860   :  { %v1326_v17 = vpop.f32.mrf.mxu1 }
 0x861   :  { %v1327_v24 = vadd.f32 %v1809_v31, %v1326_v17  ;;  %v2654_v36 = vadd.f32 %v1332_v33, %v2588_v30  ;;  %v1825_v30 = vld [vmem:[%s2732_s3 + $0x170] sm:$0xff]  ;;  %v1833_v17 = vld [vmem:[%s2733_s4 + $0x5] ss:$0 sm:$0xff] }
 0x862   :  { %v2139_v28 = vpop.f32.mrf.mxu1 }
 0x863   :  { %v2651_v29 = vadd.f32 %v1327_v24, %v2585_v23  ;;  %v1342_v37 = vadd.f32 %v2139_v28, %v1809_v31  ;;  %v1826_v23 = vld [vmem:[%s2732_s3 + $0x178] sm:$0xff] }
 0x864   :  { %v1336_v38 = vpop.f32.mrf.mxu1  ;;  %2154 = vmatprep.subr.mxu0 %v1826_v23 }
 0x865   :  { %v1337_v39 = vadd.f32 %v1809_v31, %v1336_v38  ;;  %2148 = vmatprep.mubr.msk.f32.mxu0 %vm51_vm0, %v2651_v29  ;;  %v2664_v41 = vadd.f32 %v1342_v37, %v2598_v35  ;;  %v1823_v35 = vld [vmem:[%s2732_s3 + $0x160] sm:$0xff] }
 0x866   :  { %2149 = vmatmul.mubr.msk.f32.vlgmr.msra.gmra.mxu0 %vm51_vm0, %v2654_v36 }
 0x867   :  { %v2661_v40 = vadd.f32 %v1337_v39, %v2595_v34  ;;  %2155 = vmatpush3.msra.mxu0 %v1826_v23  ;;  %v1824_v34 = vld [vmem:[%s2732_s3 + $0x168] sm:$0xff] }
 0x868   :  { %2156 = vmatprep.subr.mxu0 %v1825_v30 }
 0x869   :  { %2151 = vmatprep.mubr.msk.f32.mxu0 %vm51_vm0, %v2661_v40  ;;  %2157 = vmatpush3.msra.mxu0 %v1825_v30 }
 0x86a   :  { %2152 = vmatmul.mubr.msk.f32.gmra.mxu0 %vm51_vm0, %v2664_v41  ;;  %2158 = vmatprep.subr.mxu0 %v1824_v34 }
 0x86b   :  { %2159 = vmatpush3.msra.mxu0 %v1824_v34 }
 0x86c   :  { %2160 = vmatprep.subr.mxu0 %v1823_v35 }
 0x86d   :  { %2161 = vmatpush3.msra.mxu0 %v1823_v35 }
 0x86e   :  { %2162 = vmatprep.subr.mxu0 %v1822_v42 }
 0x86f   :  { %2163 = vmatpush3.msra.mxu0 %v1822_v42 }
 0x870   :  { %2164 = vmatprep.subr.mxu0 %v1821_v43 }
 0x871   :  { %2165 = vmatpush3.msra.mxu0 %v1821_v43 }
 0x872   :  { %2166 = vmatprep.subr.mxu0 %v1820_v44 }
 0x873   :  { %2167 = vmatpush3.msra.mxu0 %v1820_v44 }
 0x874   :  { %2168 = vmatprep.subr.mxu0 %v1819_v45 }
 0x875   :  { %2169 = vmatpush3.msra.mxu0 %v1819_v45 }
 0x926   :  { %v2150_v47 = vpop.f32.mrf.mxu0 }
 0x927   :  { %v1457_v48 = vadd.f32 %v2150_v47, %v1828_v46 }
 0x928   :  { %v1451_v49 = vpop.f32.mrf.mxu0 }
 0x929   :  { %v1471_v50 = vmul.f32 %v1457_v48, %v1457_v48  ;;  %v1452_v51 = vadd.f32 %v1828_v46, %v1451_v49 }
 0x92a   :  { %v2153_v52 = vpop.f32.mrf.mxu0 }
 0x92b   :  { %v1475_v53 = vmul.f32 %v1471_v50, %v1457_v48  ;;  %v1470_v54 = vmul.f32 %v1452_v51, %v1452_v51  ;;  %v1467_v55 = vadd.f32 %v2153_v52, %v1828_v46 }
 0x92c   :  { %v1461_v56 = vpop.f32.mrf.mxu0 }
 0x92d   :  { %v1479_v57 = vmul.f32 0.044715, %v1475_v53  ;;  %v1474_v58 = vmul.f32 %v1470_v54, %v1452_v51  ;;  %v1473_v59 = vmul.f32 %v1467_v55, %v1467_v55  ;;  %v1462_v60 = vadd.f32 %v1828_v46, %v1461_v56 }
 0x92f   :  { %v1483_v61 = vadd.f32 %v1479_v57, %v1457_v48  ;;  %v1478_v62 = vmul.f32 0.044715, %v1474_v58  ;;  %v1477_v63 = vmul.f32 %v1473_v59, %v1467_v55  ;;  %v1472_v0 = vmul.f32 %v1462_v60, %v1462_v60 }
 0x931   :  { %v1487_v1 = vmul.f32 0.7978846, %v1483_v61  ;;  %v1482_v3 = vadd.f32 %v1478_v62, %v1452_v51  ;;  %v1481_v4 = vmul.f32 0.044715, %v1477_v63  ;;  %v1476_v8 = vmul.f32 %v1472_v0, %v1462_v60 }
 0x933   :  { %2219 = vtanh.f32 %v1487_v1  ;;  %v1486_v9 = vmul.f32 0.7978846, %v1482_v3  ;;  %v1485_v10 = vadd.f32 %v1481_v4, %v1467_v55  ;;  %v1480_v13 = vmul.f32 0.044715, %v1476_v8 }
 0x935   :  { %2221 = vtanh.f32 %v1486_v9  ;;  %v1489_v14 = vmul.f32 0.7978846, %v1485_v10  ;;  %v1484_v15 = vadd.f32 %v1480_v13, %v1462_v60 }
 0x937   :  { %2223 = vtanh.f32 %v1489_v14  ;;  %v1488_v2 = vmul.f32 0.7978846, %v1484_v15 }
 0x939   :  { %2225 = vtanh.f32 %v1488_v2 }
 0x940   :  { %v2220_v5 = vpop.eup %2219 }
 0x941   :  { %v1495_v6 = vadd.f32 1.0, %v2220_v5 }
 0x942   :  { %v2222_v19 = vpop.eup %2221 }
 0x943   :  { %v1494_v20 = vadd.f32 1.0, %v2222_v19  ;;  %v1499_v11 = vmul.f32 0.5, %v1495_v6  ;;  %v1838_v19 = vld [vmem:[%s2734_s5] ss:$0 sm:$0xff]  ;;  %s2257_s5 = smov [#allocation2]  }
 0x944   :  { %v2224_v21 = vpop.eup %2223  ;;  %s1697_s9 = sshll.u32 %s2257_s5, 4  ;;  %s1698_s9 = int_to_ptr.vmem [resolvable:$true] %s1697_s9 }
 0x945   :  { %v1498_v12 = vmul.f32 0.5, %v1494_v20  ;;  %v1497_v16 = vadd.f32 1.0, %v2224_v21  ;;  %v1503_v7 = vmul.f32 %v1499_v11, %v1457_v48  ;;  %v1839_v21 = vld [vmem:[%s2735_s6] ss:$0 sm:$0xff]  ;;  %s2235_s6 = scalar_lea.vmem %s1698_s9, 512  ;;  %p2240_p1 = scmp.lt.s32.totalorder %s1698_s9, %s1698_s9 }
 0x946   :  { %v2226_v25 = vpop.eup %2225  ;;  %p2236_p0 = scmp.ne.s32.totalorder %s1698_s9, %s2235_s6  ;;  %p2241_p2 = scmp.lt.s32.totalorder %s2235_s6, %s2235_s6 }
 0x947   :  { %v1502_v26 = vmul.f32 %v1498_v12, %v1452_v51  ;;  %v1496_v27 = vadd.f32 1.0, %v2226_v25  ;;  %v1501_v18 = vmul.f32 0.5, %v1497_v16 }
 0x948   :  { %p2242_p3 = por %p2241_p2, %p2240_p1 }
 0x949   :  { %2170 = vmatprep.mubr.msk.f32.mxu0 %vm191_vm1, %v1502_v26  ;;  %v1500_v22 = vmul.f32 0.5, %v1496_v27  ;;  %v1505_v32 = vmul.f32 %v1501_v18, %v1467_v55 }
 0x94a   :  { %2171 = vmatmul.mubr.msk.f32.vlgmr.msra.gmra.mxu0 %vm191_vm1, %v1503_v7  ;;  %p2243_p4 = pnand %p2242_p3, %p2236_p0 }
 0x94b   :  { %v1504_v31 = vmul.f32 %v1500_v22, %v1462_v60 }
 0x94d   :  { %2173 = vmatprep.mubr.msk.f32.mxu0 %vm191_vm1, %v1504_v31 }
 0x94e   :  { %2174 = vmatmul.mubr.msk.f32.gmra.mxu0 %vm191_vm1, %v1505_v32 }
 0xa0a   :  { %v2172_v33 = vpop.f32.mrf.mxu0 }
 0xa0b   :  { %v1596_v28 = vadd.f32 %v2172_v33, %v1833_v17 }
 0xa0c   :  { %v1590_v24 = vpop.f32.mrf.mxu0 }
 0xa0d   :  { %v1591_v37 = vadd.f32 %v1833_v17, %v1590_v24  ;;  %v1610_v42 = vadd.f32 %v1596_v28, %v2654_v36 }
 0xa0e   :  { %v2175_v38 = vpop.f32.mrf.mxu0 }
 0xa0f   :  { %v1609_v39 = vadd.f32 %v1591_v37, %v2651_v29  ;;  %v1606_v30 = vadd.f32 %v2175_v38, %v1833_v17  ;;  %v1616_v45 = vsel %vm51_vm0, %v1610_v42, 0.0 }
 0xa10   :  { %v1600_v23 = vpop.f32.mrf.mxu0 }
 0xa11   :  { %v1601_v34 = vadd.f32 %v1833_v17, %v1600_v23  ;;  %v1613_v35 = vsel %vm51_vm0, %v1609_v39, 0.0  ;;  %v1612_v46 = vadd.f32 %v1606_v30, %v2664_v41 }
 0xa12   :  { %1614 = vadd.xlane.f32.xlu0 %v1613_v35 }
 0xa13   :  { %v1611_v43 = vadd.f32 %v1601_v34, %v2661_v40  ;;  %v1622_v29 = vsel %vm51_vm0, %v1612_v46, 0.0 }
 0xa15   :  { %v1619_v44 = vsel %vm51_vm0, %v1611_v43, 0.0 }
 0xa16   :  { %1620 = vadd.xlane.f32.xlu1 %v1619_v44  ;;  %1617 = vadd.xlane.f32.xlu0 %v1616_v45 }
 0xa1a   :  { %1623 = vadd.xlane.f32.xlu1 %v1622_v29 }
 0xa9b   :  { %v1615_v47 = vpop.xlane.xlu0 %1614 }
 0xa9c   :  { %v1626_v48 = vmul.f32 0.03125, %v1615_v47 }
 0xa9e   :  { %v1630_v49 = vsub.f32 %v1609_v39, %v1626_v48 }
 0xa9f   :  { %v1621_v50 = vpop.xlane.xlu1 %1620  ;;  %v1618_v51 = vpop.xlane.xlu0 %1617 }
 0xaa0   :  { %v1628_v36 = vmul.f32 0.03125, %v1621_v50  ;;  %v1627_v52 = vmul.f32 0.03125, %v1618_v51  ;;  %v1634_v53 = vmul.f32 %v1630_v49, %v1630_v49 }
 0xaa2   :  { %v1632_v40 = vsub.f32 %v1611_v43, %v1628_v36  ;;  %v1631_v54 = vsub.f32 %v1610_v42, %v1627_v52  ;;  %v1638_v55 = vsel %vm51_vm0, %v1634_v53, 0.0 }
 0xaa3   :  { %v1624_v56 = vpop.xlane.xlu1 %1623  ;;  %1639 = vadd.xlane.f32.xlu0 %v1638_v55 }
 0xaa4   :  { %v1629_v41 = vmul.f32 0.03125, %v1624_v56  ;;  %v1636_v57 = vmul.f32 %v1632_v40, %v1632_v40  ;;  %v1635_v58 = vmul.f32 %v1631_v54, %v1631_v54 }
 0xaa6   :  { %v1633_v59 = vsub.f32 %v1612_v46, %v1629_v41  ;;  %v1644_v60 = vsel %vm51_vm0, %v1636_v57, 0.0  ;;  %v1641_v61 = vsel %vm51_vm0, %v1635_v58, 0.0 }
 0xaa7   :  { %1645 = vadd.xlane.f32.xlu0 %v1644_v60  ;;  %1642 = vadd.xlane.f32.xlu1 %v1641_v61 }
 0xaa8   :  { %v1637_v62 = vmul.f32 %v1633_v59, %v1633_v59 }
 0xaaa   :  { %v1647_v63 = vsel %vm51_vm0, %v1637_v62, 0.0 }
 0xaab   :  { %1648 = vadd.xlane.f32.xlu1 %v1647_v63 }
 0xb2c   :  { %v1640_v0 = vpop.xlane.xlu0 %1639 }
 0xb2d   :  { %v1650_v1 = vmul.f32 0.03125, %v1640_v0 }
 0xb2f   :  { %v1654_v3 = vadd.f32 1e-05, %v1650_v1 }
 0xb30   :  { %v1643_v4 = vpop.xlane.xlu1 %1642  ;;  %v1646_v8 = vpop.xlane.xlu0 %1645 }
 0xb31   :  { %2227 = vrsqrt.f32 %v1654_v3  ;;  %v1651_v9 = vmul.f32 0.03125, %v1643_v4  ;;  %v1652_v10 = vmul.f32 0.03125, %v1646_v8 }
 0xb33   :  { %v1655_v13 = vadd.f32 1e-05, %v1651_v9  ;;  %v1656_v14 = vadd.f32 1e-05, %v1652_v10 }
 0xb34   :  { %v1649_v15 = vpop.xlane.xlu1 %1648 }
 0xb35   :  { %2229 = vrsqrt.f32 %v1655_v13  ;;  %v1653_v2 = vmul.f32 0.03125, %v1649_v15 }
 0xb36   :  { %2231 = vrsqrt.f32 %v1656_v14 }
 0xb37   :  { %v1657_v5 = vadd.f32 1e-05, %v1653_v2 }
 0xb39   :  { %2233 = vrsqrt.f32 %v1657_v5 }
 0xb3e   :  { %v2228_v6 = vpop.eup %2227 }
 0xb3f   :  { %v1662_v20 = vmul.f32 %v2228_v6, %v1630_v49 }
 0xb41   :  { %v1673_v11 = vmul.f32 %v1838_v19, %v1662_v20 }
 0xb42   :  { %v2230_v12 = vpop.eup %2229 }
 0xb43   :  { %v2232_v16 = vpop.eup %2231  ;;  %v1663_v25 = vmul.f32 %v2230_v12, %v1631_v54  ;;  %v1684_v26 = vadd.f32 %v1839_v21, %v1673_v11 }
 0xb44   :  { %v1664_v27 = vmul.f32 %v2232_v16, %v1632_v40 }
 0xb45   :  { %v1674_v7 = vmul.f32 %v1838_v19, %v1663_v25  ;;  %1688 = vst.msk [vmem:[#allocation2] sm:$0xff] %vm51_vm0, %v1684_v26 }
 0xb46   :  { %v2234_v18 = vpop.eup %2233  ;;  %v1675_v22 = vmul.f32 %v1838_v19, %v1664_v27 }
 0xb47   :  { %v1665_v31 = vmul.f32 %v2234_v18, %v1633_v59  ;;  %v1685_v32 = vadd.f32 %v1839_v21, %v1674_v7 }
 0xb48   :  { %v1686_v33 = vadd.f32 %v1839_v21, %v1675_v22 }
 0xb49   :  { %v1676_v17 = vmul.f32 %v1838_v19, %v1665_v31  ;;  %1689 = vst.msk [vmem:[#allocation2 + $0x8] sm:$0xff] %vm51_vm0, %v1685_v32 }
 0xb4a   :  { %1690 = vst.msk [vmem:[#allocation2 + $0x10] sm:$0xff] %vm51_vm0, %v1686_v33 }
 0xb4b   :  { %v1687_v24 = vadd.f32 %v1839_v21, %v1676_v17 }
 0xb4d   :  { %1691 = vst.msk [vmem:[#allocation2 + $0x18] sm:$0xff] %vm51_vm0, %v1687_v24 }
 0xb4e   :  { %2246 = shalt.err (!%p2243_p4)
}
 0xb4f   :  { %s2258_s10 = smov 128   ;;  %s2259_s11 = smov 8  }
 0xb50   :  { %1703 = dma.vmem_to_hbm [thread:$0]  %s1698_s9, 512, %s2736_s7, [#allocation3], %s2258_s10, %s2258_s10, %s2259_s11  }
 0xb51   :  { %2255 = dma.done.wait [#allocation3], 512  }
 0xb52   :  { %2256 = vsyncadd [#allocation3], 4294966784 }
 0xb53   :  { %1707 = vsyncpa [#allocation3], 1 }

</bundles_post_ra>
